<compile_context>
chip_gen: v7x
topology: tpu7x:2x2x1
jax: 0.10.0
libtpu: 0.0.40
codegen_flags: <defaults>
</compile_context>

<pallas_src>
import functools

import numpy as np
import jax
import jax.numpy as jnp
from jax.experimental import pallas as pl
from jax.experimental.pallas import tpu as pltpu


# ---------------------------------------------------------------------------
# Kernel: BT images per grid step.
# ---------------------------------------------------------------------------
def _sam_kernel(x_ref, edge_ref, wsp_ref, bsp_ref, pool_ref, w1_ref, b1_ref,
                w2_ref, we_ref, o_ref, *, normalize, bt, L, num_s):
    f32 = jnp.float32
    x = x_ref[...].astype(f32)          # (C, BT*L)
    edge = edge_ref[...].astype(f32)    # (E, BT*L)

    # softmax over edge channels, keep channel 1 (== F.softmax(edge, 1)[:, 1]).
    # For E == 2 this is exactly sigmoid(e1 - e0) (cheaper: EUP slot only).
    if edge.shape[0] == 2:
        edge_attn = jax.nn.sigmoid(edge[1:2, :] - edge[0:1, :])       # (1, BT*L)
    else:
        em = jnp.max(edge, axis=0, keepdims=True)
        ee = jnp.exp(edge - em)
        edge_attn = ee[1:2, :] / jnp.sum(ee, axis=0, keepdims=True)   # (1, BT*L)

    # fused conv_state || conv_proj : one (2S, C) @ (C, BT*L) MXU matmul
    wsp = wsp_ref[...].astype(f32)      # (2S, C)
    bsp = bsp_ref[...].astype(f32)      # (2S, 1)
    sp = jnp.dot(wsp, x, preferred_element_type=f32) + bsp            # (2S, BT*L)
    x_state = sp[:num_s, :]                                           # (S, BT*L)
    x_proj = sp[num_s:, :]                                            # (S, BT*L)
    x_mask = x_proj * edge_attn                                       # (S, BT*L)

    pool = pool_ref[...].astype(f32)    # (L, N) interior-bin average matrix
    w1 = w1_ref[...].astype(f32)        # (N, N)
    b1 = b1_ref[...].astype(f32)        # (1, N)
    w2 = w2_ref[...].astype(f32)        # (S, S)
    we = we_ref[...].astype(f32)        # (C, S)
    inv_l = 1.0 / L

    # Per-image attention chain.  BT is small and static; every slice below is
    # lane-aligned (multiples of L = 256) / sublane-aligned (multiples of 8).
    for i in range(bt):
        sl = slice(i * L, (i + 1) * L)
        xs_i = x_state[:, sl]           # (S, L)
        xp_i = x_proj[:, sl]            # (S, L)
        xm_i = x_mask[:, sl]            # (S, L)

        # adaptive-avg-pool(6,6) interior crop as a canonical matmul
        x_anchor = jnp.dot(xm_i, pool, preferred_element_type=f32)    # (S, N)

        # attention logits: x_anchor^T @ x_proj  (transpose only on the tiny
        # (S, N) operand)
        logits = jax.lax.dot_general(
            x_anchor, xp_i, (((0,), (0,)), ((), ())),
            preferred_element_type=f32)                               # (N, L)
        lm = jnp.max(logits, axis=0, keepdims=True)
        le = jnp.exp(logits - lm)
        attn = le / jnp.sum(le, axis=0, keepdims=True)                # (N, L)

        # project states onto nodes: x_state @ attn^T
        x_n = jax.lax.dot_general(
            xs_i, attn, (((1,), (1,)), ((), ())),
            preferred_element_type=f32)                               # (S, N)
        if normalize:
            x_n = x_n * inv_l

        # GCN: h = relu(W2 @ ((x_n @ W1^T + b1) - x_n))
        g = jax.lax.dot_general(
            x_n, w1, (((1,), (1,)), ((), ())),
            preferred_element_type=f32) + b1                          # (S, N)
        g = g - x_n
        h = jnp.maximum(jnp.dot(w2, g, preferred_element_type=f32), 0.0)

        # reassociated back-projection + residual:
        #   y = x + (We @ h) @ attn     (one tiny matmul + one L-wide matmul)
        wh = jnp.dot(we, h, preferred_element_type=f32)               # (C, N)
        y_i = x[:, sl] + jnp.dot(wh, attn, preferred_element_type=f32)  # (C, L)
        o_ref[:, sl] = y_i.astype(o_ref.dtype)


# ---------------------------------------------------------------------------
# Host-side helpers
# ---------------------------------------------------------------------------
def _adaptive_pool_matrix(h, w, mids):
    """(L, N) matrix: column k averages the k-th interior bin of the
    (mids+2)^2 adaptive average pool (PyTorch bin boundaries),
    k = (i-1)*mids + (j-1)."""
    oh = ow = mids + 2
    num_n = mids * mids
    p = np.zeros((h * w, num_n), dtype=np.float32)
    for oi in range(1, oh - 1):
        r0 = (oi * h) // oh
        r1 = -(-((oi + 1) * h) // oh)          # ceil
        for oj in range(1, ow - 1):
            c0 = (oj * w) // ow
            c1 = -(-((oj + 1) * w) // ow)
            inv = 1.0 / ((r1 - r0) * (c1 - c0))
            col = (oi - 1) * mids + (oj - 1)
            for r in range(r0, r1):
                p[r * w + c0: r * w + c1, col] = inv
    return jnp.asarray(p)


def sam_forward(x, edge, params, *, mids=4, normalize=False, bt=8):
    """x: (B, C, H, W); edge: (B, E>=2, eh, ew).  Returns (B, C, H, W)."""
    n, c, h, w = x.shape
    num_s = params["conv_state_w"].shape[0]
    num_n = mids * mids
    L = h * w
    E = edge.shape[1]

    # F.upsample(edge, (h, w)), mode='nearest'  -> pure gather in the wrapper.
    eh, ew = edge.shape[2], edge.shape[3]
    ridx = (jnp.arange(h) * eh) // h
    cidx = (jnp.arange(w) * ew) // w
    edge_up = edge[:, :, ridx][:, :, :, cidx]            # (n, E, h, w)

    # batch tile size: BT images per grid step (pad batch to a multiple of BT)
    bt = max(1, min(bt, n))
    n_pad = -(-n // bt) * bt
    x_b = x.reshape(n, c, L)
    e_b = edge_up.reshape(n, E, L)
    if n_pad != n:
        pad = n_pad - n
        x_b = jnp.concatenate([x_b, jnp.zeros((pad, c, L), x.dtype)], axis=0)
        e_b = jnp.concatenate([e_b, jnp.zeros((pad, E, L), e_b.dtype)], axis=0)

    # lane-dense slabs: (C, n_pad*L), (E, n_pad*L)
    x_slab = jnp.transpose(x_b, (1, 0, 2)).reshape(c, n_pad * L)
    e_slab = jnp.transpose(e_b, (1, 0, 2)).reshape(E, n_pad * L)

    pool = _adaptive_pool_matrix(h, w, mids)             # (L, num_n)

    # fused conv_state || conv_proj weights
    wsp = jnp.concatenate([params["conv_state_w"], params["conv_proj_w"]], 0)
    bsp = jnp.concatenate([params["conv_state_b"], params["conv_proj_b"]],
                          0).reshape(2 * num_s, 1)
    w1 = params["gcn_conv1_w"]
    b1 = params["gcn_conv1_b"].reshape(1, num_n)
    w2 = params["gcn_conv2_w"]
    we = params["conv_extend_w"]

    kernel = functools.partial(_sam_kernel, normalize=normalize, bt=bt, L=L,
                               num_s=num_s)

    out_slab = pl.pallas_call(
        kernel,
        out_shape=jax.ShapeDtypeStruct((c, n_pad * L), x.dtype),
        grid_spec=pltpu.PrefetchScalarGridSpec(
            num_scalar_prefetch=0,
            grid=(n_pad // bt,),
            in_specs=[
                # batch-tiled, lane-dense slabs
                pl.BlockSpec((c, bt * L), lambda g: (0, g)),          # x
                pl.BlockSpec((E, bt * L), lambda g: (0, g)),          # edge
                # weights: constant block index -> resident, no re-DMA
                pl.BlockSpec((2 * num_s, c), lambda g: (0, 0)),       # Ws||Wp
                pl.BlockSpec((2 * num_s, 1), lambda g: (0, 0)),       # bs||bp
                pl.BlockSpec((L, num_n), lambda g: (0, 0)),           # pool
                pl.BlockSpec((num_n, num_n), lambda g: (0, 0)),       # W1
                pl.BlockSpec((1, num_n), lambda g: (0, 0)),           # b1
                pl.BlockSpec((num_s, num_s), lambda g: (0, 0)),       # W2
                pl.BlockSpec((c, num_s), lambda g: (0, 0)),           # We
            ],
            out_specs=pl.BlockSpec((c, bt * L), lambda g: (0, g)),
        ),
        compiler_params=pltpu.CompilerParams(
            dimension_semantics=("parallel",)),
    )(x_slab, e_slab, wsp, bsp, pool, w1, b1, w2, we)

    out = out_slab.reshape(c, n_pad, L)[:, :n, :]
    return jnp.transpose(out, (1, 0, 2)).reshape(n, c, h, w)


# ---------------------------------------------------------------------------
# Pure-JAX reference matching the PyTorch SAM forward.
# ---------------------------------------------------------------------------
def _reference(x, edge, params, *, mids=4, normalize=False):
    n, c, h, w = x.shape
    num_s = params["conv_state_w"].shape[0]
    num_n = mids * mids
    L = h * w

    eh, ew = edge.shape[2], edge.shape[3]
    ridx = (jnp.arange(h) * eh) // h
    cidx = (jnp.arange(w) * ew) // w
    edge_up = edge[:, :, ridx][:, :, :, cidx]
    edge_attn = jax.nn.softmax(edge_up, axis=1)[:, 1:2]           # (n,1,h,w)

    xf = x.reshape(n, c, L)
    x_state = (jnp.einsum("sc,ncl->nsl", params["conv_state_w"], xf)
               + params["conv_state_b"][None, :, None])
    x_proj = (jnp.einsum("sc,ncl->nsl", params["conv_proj_w"], xf)
              + params["conv_proj_b"][None, :, None])
    x_mask = x_proj.reshape(n, num_s, h, w) * edge_attn

    oh = ow = mids + 2
    rows = []
    for oi in range(oh):
        r0, r1 = (oi * h) // oh, -(-((oi + 1) * h) // oh)
        cols = []
        for oj in range(ow):
            c0, c1 = (oj * w) // ow, -(-((oj + 1) * w) // ow)
            cols.append(jnp.mean(x_mask[:, :, r0:r1, c0:c1], axis=(2, 3)))
        rows.append(jnp.stack(cols, axis=-1))
    pooled = jnp.stack(rows, axis=-2)                             # (n,S,6,6)
    x_anchor = pooled[:, :, 1:-1, 1:-1].reshape(n, num_s, num_n)
    x_anchor = jnp.transpose(x_anchor, (0, 2, 1))                 # (n,N,S)

    x_proj_r = jax.nn.softmax(jnp.matmul(x_anchor, x_proj), axis=1)    # (n,N,L)
    x_n_state = jnp.matmul(x_state, jnp.transpose(x_proj_r, (0, 2, 1)))
    if normalize:
        x_n_state = x_n_state * (1.0 / L)

    g = (jnp.einsum("nsi,ji->nsj", x_n_state, params["gcn_conv1_w"])
         + params["gcn_conv1_b"][None, None, :])
    g = g - x_n_state
    g = jax.nn.relu(jnp.einsum("ts,nsj->ntj", params["gcn_conv2_w"], g))
    x_out = jnp.matmul(g, x_proj_r)                               # (n,S,L)
    out = xf + jnp.einsum("cs,nsl->ncl", params["conv_extend_w"], x_out)
    return out.reshape(n, c, h, w)


if __name__ == "__main__":
    key = jax.random.PRNGKey(0)
    keys = jax.random.split(key, 10)

    # SAM defaults: num_in=32, plane_mid=16 -> num_s=16, mids=4 -> num_n=16
    B, C, H, W = 6, 32, 16, 16
    plane_mid, mids = 16, 4
    num_s, num_n = plane_mid, mids * mids
    EH = EW = 8      # edge at half resolution, upsampled to (H, W) in forward

    x = jax.random.normal(keys[0], (B, C, H, W), dtype=jnp.float32)
    edge = jax.random.normal(keys[1], (B, 2, EH, EW), dtype=jnp.float32)

    params = {
        "conv_state_w": 0.1 * jax.random.normal(keys[2], (num_s, C), jnp.float32),
        "conv_state_b": 0.1 * jax.random.normal(keys[3], (num_s,), jnp.float32),
        "conv_proj_w": 0.1 * jax.random.normal(keys[4], (num_s, C), jnp.float32),
        "conv_proj_b": 0.1 * jax.random.normal(keys[5], (num_s,), jnp.float32),
        "gcn_conv1_w": 0.1 * jax.random.normal(keys[6], (num_n, num_n), jnp.float32),
        "gcn_conv1_b": 0.1 * jax.random.normal(keys[7], (num_n,), jnp.float32),
        "gcn_conv2_w": 0.1 * jax.random.normal(keys[8], (num_s, num_s), jnp.float32),
        "conv_extend_w": 0.1 * jax.random.normal(keys[9], (C, num_s), jnp.float32),
    }

    # bt=4 -> batch padded 6 -> 8, grid=(2,): exercises multi-step grid and
    # the batch-padding path.
    out = sam_forward(x, edge, params, mids=mids, normalize=False, bt=4)
    out = jax.block_until_ready(out)

    ref = _reference(x, edge, params, mids=mids, normalize=False)
    assert out.shape == (B, C, H, W), out.shape
    err = float(jnp.max(jnp.abs(out - ref)))
    assert jnp.allclose(out, ref, atol=1e-3, rtol=1e-3), err

    print("KERNEL_OK")
</pallas_src>

<mosaic_0001>
module attributes {stable_mosaic.version = 11 : i64} {
  func.func @_sam_kernel(%arg0: i32, %arg1: memref<32x1024xf32, #tpu.memory_space<vmem>>, %arg2: memref<2x1024xf32, #tpu.memory_space<vmem>>, %arg3: memref<32x32xf32, #tpu.memory_space<vmem>>, %arg4: memref<32x1xf32, #tpu.memory_space<vmem>>, %arg5: memref<256x16xf32, #tpu.memory_space<vmem>>, %arg6: memref<16x16xf32, #tpu.memory_space<vmem>>, %arg7: memref<1x16xf32, #tpu.memory_space<vmem>>, %arg8: memref<16x16xf32, #tpu.memory_space<vmem>>, %arg9: memref<32x16xf32, #tpu.memory_space<vmem>>, %arg10: memref<32x1024xf32, #tpu.memory_space<vmem>>) attributes {dimension_semantics = [#tpu.dimension_semantics<parallel>], iteration_bounds = array<i64: 2>, scalar_prefetch = 0 : i64, scratch_operands = 0 : i64, tpu.core_type = #tpu.core_type<tc>, window_params = [{transform_indices = @transform_0, window_bounds = array<i64: 32, 1024>}, {transform_indices = @transform_1, window_bounds = array<i64: 2, 1024>}, {pipeline_mode = #tpu.pipeline_mode<synchronous>, transform_indices = @transform_2, window_bounds = array<i64: 32, 32>}, {pipeline_mode = #tpu.pipeline_mode<synchronous>, transform_indices = @transform_3, window_bounds = array<i64: 32, 1>}, {pipeline_mode = #tpu.pipeline_mode<synchronous>, transform_indices = @transform_4, window_bounds = array<i64: 256, 16>}, {pipeline_mode = #tpu.pipeline_mode<synchronous>, transform_indices = @transform_5, window_bounds = array<i64: 16, 16>}, {pipeline_mode = #tpu.pipeline_mode<synchronous>, transform_indices = @transform_6, window_bounds = array<i64: 1, 16>}, {pipeline_mode = #tpu.pipeline_mode<synchronous>, transform_indices = @transform_7, window_bounds = array<i64: 16, 16>}, {pipeline_mode = #tpu.pipeline_mode<synchronous>, transform_indices = @transform_8, window_bounds = array<i64: 32, 16>}, {transform_indices = @transform_9, window_bounds = array<i64: 32, 1024>}]} {
    %c0 = arith.constant 0 : index
    %c0_0 = arith.constant 0 : index
    %0 = vector.load %arg1[%c0, %c0_0] : memref<32x1024xf32, #tpu.memory_space<vmem>>, vector<32x1024xf32>
    %c0_1 = arith.constant 0 : index
    %c0_2 = arith.constant 0 : index
    %1 = vector.load %arg2[%c0_1, %c0_2] : memref<2x1024xf32, #tpu.memory_space<vmem>>, vector<2x1024xf32>
    %2 = vector.extract_strided_slice %1 {offsets = [1, 0], sizes = [1, 1024], strides = [1, 1]} : vector<2x1024xf32> to vector<1x1024xf32>
    %3 = vector.extract_strided_slice %1 {offsets = [0, 0], sizes = [1, 1024], strides = [1, 1]} : vector<2x1024xf32> to vector<1x1024xf32>
    %4 = arith.subf %2, %3 : vector<1x1024xf32>
    %5 = arith.negf %4 : vector<1x1024xf32>
    %6 = math.exp %5 : vector<1x1024xf32>
    %cst = arith.constant 1.000000e+00 : f32
    %7 = vector.broadcast %cst : f32 to vector<1x1024xf32>
    %8 = arith.addf %7, %6 : vector<1x1024xf32>
    %9 = arith.divf %7, %8 : vector<1x1024xf32>
    %c0_3 = arith.constant 0 : index
    %c0_4 = arith.constant 0 : index
    %10 = vector.load %arg3[%c0_3, %c0_4] : memref<32x32xf32, #tpu.memory_space<vmem>>, vector<32x32xf32>
    %c0_5 = arith.constant 0 : index
    %c0_6 = arith.constant 0 : index
    %11 = vector.load %arg4[%c0_5, %c0_6] : memref<32x1xf32, #tpu.memory_space<vmem>>, vector<32x1xf32>
    %cst_7 = arith.constant dense<0.000000e+00> : vector<32x1024xf32>
    %12 = tpu.matmul %10, %0, %cst_7 {dimension_numbers = #tpu.dot_dimension_numbers<[1], [0], [0], [1], [0, 0, 1, 1], [], []>} : vector<32x32xf32>, vector<32x1024xf32>, vector<32x1024xf32> -> vector<32x1024xf32>
    %13 = vector.broadcast %11 : vector<32x1xf32> to vector<32x1024xf32>
    %14 = arith.addf %12, %13 : vector<32x1024xf32>
    %15 = vector.extract_strided_slice %14 {offsets = [0, 0], sizes = [16, 1024], strides = [1, 1]} : vector<32x1024xf32> to vector<16x1024xf32>
    %16 = vector.extract_strided_slice %14 {offsets = [16, 0], sizes = [16, 1024], strides = [1, 1]} : vector<32x1024xf32> to vector<16x1024xf32>
    %17 = vector.broadcast %9 : vector<1x1024xf32> to vector<16x1024xf32>
    %18 = arith.mulf %16, %17 : vector<16x1024xf32>
    %c0_8 = arith.constant 0 : index
    %c0_9 = arith.constant 0 : index
    %19 = vector.load %arg5[%c0_8, %c0_9] : memref<256x16xf32, #tpu.memory_space<vmem>>, vector<256x16xf32>
    %c0_10 = arith.constant 0 : index
    %c0_11 = arith.constant 0 : index
    %20 = vector.load %arg6[%c0_10, %c0_11] : memref<16x16xf32, #tpu.memory_space<vmem>>, vector<16x16xf32>
    %c0_12 = arith.constant 0 : index
    %c0_13 = arith.constant 0 : index
    %21 = vector.load %arg7[%c0_12, %c0_13] : memref<1x16xf32, #tpu.memory_space<vmem>>, vector<1x16xf32>
    %c0_14 = arith.constant 0 : index
    %c0_15 = arith.constant 0 : index
    %22 = vector.load %arg8[%c0_14, %c0_15] : memref<16x16xf32, #tpu.memory_space<vmem>>, vector<16x16xf32>
    %c0_16 = arith.constant 0 : index
    %c0_17 = arith.constant 0 : index
    %23 = vector.load %arg9[%c0_16, %c0_17] : memref<32x16xf32, #tpu.memory_space<vmem>>, vector<32x16xf32>
    %24 = vector.extract_strided_slice %15 {offsets = [0, 0], sizes = [16, 256], strides = [1, 1]} : vector<16x1024xf32> to vector<16x256xf32>
    %25 = vector.extract_strided_slice %16 {offsets = [0, 0], sizes = [16, 256], strides = [1, 1]} : vector<16x1024xf32> to vector<16x256xf32>
    %26 = vector.extract_strided_slice %18 {offsets = [0, 0], sizes = [16, 256], strides = [1, 1]} : vector<16x1024xf32> to vector<16x256xf32>
    %cst_18 = arith.constant dense<0.000000e+00> : vector<16x16xf32>
    %27 = tpu.matmul %26, %19, %cst_18 {dimension_numbers = #tpu.dot_dimension_numbers<[1], [0], [0], [1], [0, 0, 1, 1], [], []>} : vector<16x256xf32>, vector<256x16xf32>, vector<16x16xf32> -> vector<16x16xf32>
    %cst_19 = arith.constant dense<0.000000e+00> : vector<16x256xf32>
    %28 = tpu.matmul %27, %25, %cst_19 {dimension_numbers = #tpu.dot_dimension_numbers<[0], [0], [1], [1], [0, 1, 1, 1], [], []>} : vector<16x16xf32>, vector<16x256xf32>, vector<16x256xf32> -> vector<16x256xf32>
    %cst_20 = arith.constant dense<0xFF800000> : vector<256xf32>
    %29 = vector.multi_reduction <maximumf>, %28, %cst_20 [0] : vector<16x256xf32> to vector<256xf32>
    %30 = vector.shape_cast %29 : vector<256xf32> to vector<1x256xf32>
    %31 = vector.broadcast %30 : vector<1x256xf32> to vector<16x256xf32>
    %32 = arith.subf %28, %31 : vector<16x256xf32>
    %33 = math.exp %32 : vector<16x256xf32>
    %cst_21 = arith.constant dense<0.000000e+00> : vector<256xf32>
    %34 = vector.multi_reduction <add>, %33, %cst_21 [0] : vector<16x256xf32> to vector<256xf32>
    %35 = vector.shape_cast %34 : vector<256xf32> to vector<1x256xf32>
    %36 = vector.broadcast %35 : vector<1x256xf32> to vector<16x256xf32>
    %37 = arith.divf %33, %36 : vector<16x256xf32>
    %cst_22 = arith.constant dense<0.000000e+00> : vector<16x16xf32>
    %38 = tpu.matmul %24, %37, %cst_22 {dimension_numbers = #tpu.dot_dimension_numbers<[1], [1], [0], [0], [0, 0, 1, 0], [], []>} : vector<16x256xf32>, vector<16x256xf32>, vector<16x16xf32> -> vector<16x16xf32>
    %cst_23 = arith.constant dense<0.000000e+00> : vector<16x16xf32>
    %39 = tpu.matmul %38, %20, %cst_23 {dimension_numbers = #tpu.dot_dimension_numbers<[1], [1], [0], [0], [0, 0, 1, 0], [], []>} : vector<16x16xf32>, vector<16x16xf32>, vector<16x16xf32> -> vector<16x16xf32>
    %40 = vector.broadcast %21 : vector<1x16xf32> to vector<16x16xf32>
    %41 = arith.addf %39, %40 : vector<16x16xf32>
    %42 = arith.subf %41, %38 : vector<16x16xf32>
    %cst_24 = arith.constant dense<0.000000e+00> : vector<16x16xf32>
    %43 = tpu.matmul %22, %42, %cst_24 {dimension_numbers = #tpu.dot_dimension_numbers<[1], [0], [0], [1], [0, 0, 1, 1], [], []>} : vector<16x16xf32>, vector<16x16xf32>, vector<16x16xf32> -> vector<16x16xf32>
    %cst_25 = arith.constant 0.000000e+00 : f32
    %44 = vector.broadcast %cst_25 : f32 to vector<16x16xf32>
    %45 = arith.maximumf %43, %44 : vector<16x16xf32>
    %cst_26 = arith.constant dense<0.000000e+00> : vector<32x16xf32>
    %46 = tpu.matmul %23, %45, %cst_26 {dimension_numbers = #tpu.dot_dimension_numbers<[1], [0], [0], [1], [0, 0, 1, 1], [], []>} : vector<32x16xf32>, vector<16x16xf32>, vector<32x16xf32> -> vector<32x16xf32>
    %47 = vector.extract_strided_slice %0 {offsets = [0, 0], sizes = [32, 256], strides = [1, 1]} : vector<32x1024xf32> to vector<32x256xf32>
    %cst_27 = arith.constant dense<0.000000e+00> : vector<32x256xf32>
    %48 = tpu.matmul %46, %37, %cst_27 {dimension_numbers = #tpu.dot_dimension_numbers<[1], [0], [0], [1], [0, 0, 1, 1], [], []>} : vector<32x16xf32>, vector<16x256xf32>, vector<32x256xf32> -> vector<32x256xf32>
    %49 = arith.addf %47, %48 : vector<32x256xf32>
    %c0_28 = arith.constant 0 : index
    %c0_29 = arith.constant 0 : index
    %50 = vector.load %arg10[%c0_28, %c0_29] : memref<32x1024xf32, #tpu.memory_space<vmem>>, vector<32x256xf32>
    tpu.vector_store %arg10[%c0_28, %c0_29], %49 {strides = array<i32>} : memref<32x1024xf32, #tpu.memory_space<vmem>>, vector<32x256xf32>,
    %51 = vector.extract_strided_slice %15 {offsets = [0, 256], sizes = [16, 256], strides = [1, 1]} : vector<16x1024xf32> to vector<16x256xf32>
    %52 = vector.extract_strided_slice %16 {offsets = [0, 256], sizes = [16, 256], strides = [1, 1]} : vector<16x1024xf32> to vector<16x256xf32>
    %53 = vector.extract_strided_slice %18 {offsets = [0, 256], sizes = [16, 256], strides = [1, 1]} : vector<16x1024xf32> to vector<16x256xf32>
    %cst_30 = arith.constant dense<0.000000e+00> : vector<16x16xf32>
    %54 = tpu.matmul %53, %19, %cst_30 {dimension_numbers = #tpu.dot_dimension_numbers<[1], [0], [0], [1], [0, 0, 1, 1], [], []>} : vector<16x256xf32>, vector<256x16xf32>, vector<16x16xf32> -> vector<16x16xf32>
    %cst_31 = arith.constant dense<0.000000e+00> : vector<16x256xf32>
    %55 = tpu.matmul %54, %52, %cst_31 {dimension_numbers = #tpu.dot_dimension_numbers<[0], [0], [1], [1], [0, 1, 1, 1], [], []>} : vector<16x16xf32>, vector<16x256xf32>, vector<16x256xf32> -> vector<16x256xf32>
    %cst_32 = arith.constant dense<0xFF800000> : vector<256xf32>
    %56 = vector.multi_reduction <maximumf>, %55, %cst_32 [0] : vector<16x256xf32> to vector<256xf32>
    %57 = vector.shape_cast %56 : vector<256xf32> to vector<1x256xf32>
    %58 = vector.broadcast %57 : vector<1x256xf32> to vector<16x256xf32>
    %59 = arith.subf %55, %58 : vector<16x256xf32>
    %60 = math.exp %59 : vector<16x256xf32>
    %cst_33 = arith.constant dense<0.000000e+00> : vector<256xf32>
    %61 = vector.multi_reduction <add>, %60, %cst_33 [0] : vector<16x256xf32> to vector<256xf32>
    %62 = vector.shape_cast %61 : vector<256xf32> to vector<1x256xf32>
    %63 = vector.broadcast %62 : vector<1x256xf32> to vector<16x256xf32>
    %64 = arith.divf %60, %63 : vector<16x256xf32>
    %cst_34 = arith.constant dense<0.000000e+00> : vector<16x16xf32>
    %65 = tpu.matmul %51, %64, %cst_34 {dimension_numbers = #tpu.dot_dimension_numbers<[1], [1], [0], [0], [0, 0, 1, 0], [], []>} : vector<16x256xf32>, vector<16x256xf32>, vector<16x16xf32> -> vector<16x16xf32>
    %cst_35 = arith.constant dense<0.000000e+00> : vector<16x16xf32>
    %66 = tpu.matmul %65, %20, %cst_35 {dimension_numbers = #tpu.dot_dimension_numbers<[1], [1], [0], [0], [0, 0, 1, 0], [], []>} : vector<16x16xf32>, vector<16x16xf32>, vector<16x16xf32> -> vector<16x16xf32>
    %67 = vector.broadcast %21 : vector<1x16xf32> to vector<16x16xf32>
    %68 = arith.addf %66, %67 : vector<16x16xf32>
    %69 = arith.subf %68, %65 : vector<16x16xf32>
    %cst_36 = arith.constant dense<0.000000e+00> : vector<16x16xf32>
    %70 = tpu.matmul %22, %69, %cst_36 {dimension_numbers = #tpu.dot_dimension_numbers<[1], [0], [0], [1], [0, 0, 1, 1], [], []>} : vector<16x16xf32>, vector<16x16xf32>, vector<16x16xf32> -> vector<16x16xf32>
    %cst_37 = arith.constant 0.000000e+00 : f32
    %71 = vector.broadcast %cst_37 : f32 to vector<16x16xf32>
    %72 = arith.maximumf %70, %71 : vector<16x16xf32>
    %cst_38 = arith.constant dense<0.000000e+00> : vector<32x16xf32>
    %73 = tpu.matmul %23, %72, %cst_38 {dimension_numbers = #tpu.dot_dimension_numbers<[1], [0], [0], [1], [0, 0, 1, 1], [], []>} : vector<32x16xf32>, vector<16x16xf32>, vector<32x16xf32> -> vector<32x16xf32>
    %74 = vector.extract_strided_slice %0 {offsets = [0, 256], sizes = [32, 256], strides = [1, 1]} : vector<32x1024xf32> to vector<32x256xf32>
    %cst_39 = arith.constant dense<0.000000e+00> : vector<32x256xf32>
    %75 = tpu.matmul %73, %64, %cst_39 {dimension_numbers = #tpu.dot_dimension_numbers<[1], [0], [0], [1], [0, 0, 1, 1], [], []>} : vector<32x16xf32>, vector<16x256xf32>, vector<32x256xf32> -> vector<32x256xf32>
    %76 = arith.addf %74, %75 : vector<32x256xf32>
    %c0_40 = arith.constant 0 : index
    %c256 = arith.constant 256 : index
    %77 = vector.load %arg10[%c0_40, %c256] : memref<32x1024xf32, #tpu.memory_space<vmem>>, vector<32x256xf32>
    tpu.vector_store %arg10[%c0_40, %c256], %76 {strides = array<i32>} : memref<32x1024xf32, #tpu.memory_space<vmem>>, vector<32x256xf32>,
    %78 = vector.extract_strided_slice %15 {offsets = [0, 512], sizes = [16, 256], strides = [1, 1]} : vector<16x1024xf32> to vector<16x256xf32>
    %79 = vector.extract_strided_slice %16 {offsets = [0, 512], sizes = [16, 256], strides = [1, 1]} : vector<16x1024xf32> to vector<16x256xf32>
    %80 = vector.extract_strided_slice %18 {offsets = [0, 512], sizes = [16, 256], strides = [1, 1]} : vector<16x1024xf32> to vector<16x256xf32>
    %cst_41 = arith.constant dense<0.000000e+00> : vector<16x16xf32>
    %81 = tpu.matmul %80, %19, %cst_41 {dimension_numbers = #tpu.dot_dimension_numbers<[1], [0], [0], [1], [0, 0, 1, 1], [], []>} : vector<16x256xf32>, vector<256x16xf32>, vector<16x16xf32> -> vector<16x16xf32>
    %cst_42 = arith.constant dense<0.000000e+00> : vector<16x256xf32>
    %82 = tpu.matmul %81, %79, %cst_42 {dimension_numbers = #tpu.dot_dimension_numbers<[0], [0], [1], [1], [0, 1, 1, 1], [], []>} : vector<16x16xf32>, vector<16x256xf32>, vector<16x256xf32> -> vector<16x256xf32>
    %cst_43 = arith.constant dense<0xFF800000> : vector<256xf32>
    %83 = vector.multi_reduction <maximumf>, %82, %cst_43 [0] : vector<16x256xf32> to vector<256xf32>
    %84 = vector.shape_cast %83 : vector<256xf32> to vector<1x256xf32>
    %85 = vector.broadcast %84 : vector<1x256xf32> to vector<16x256xf32>
    %86 = arith.subf %82, %85 : vector<16x256xf32>
    %87 = math.exp %86 : vector<16x256xf32>
    %cst_44 = arith.constant dense<0.000000e+00> : vector<256xf32>
    %88 = vector.multi_reduction <add>, %87, %cst_44 [0] : vector<16x256xf32> to vector<256xf32>
    %89 = vector.shape_cast %88 : vector<256xf32> to vector<1x256xf32>
    %90 = vector.broadcast %89 : vector<1x256xf32> to vector<16x256xf32>
    %91 = arith.divf %87, %90 : vector<16x256xf32>
    %cst_45 = arith.constant dense<0.000000e+00> : vector<16x16xf32>
    %92 = tpu.matmul %78, %91, %cst_45 {dimension_numbers = #tpu.dot_dimension_numbers<[1], [1], [0], [0], [0, 0, 1, 0], [], []>} : vector<16x256xf32>, vector<16x256xf32>, vector<16x16xf32> -> vector<16x16xf32>
    %cst_46 = arith.constant dense<0.000000e+00> : vector<16x16xf32>
    %93 = tpu.matmul %92, %20, %cst_46 {dimension_numbers = #tpu.dot_dimension_numbers<[1], [1], [0], [0], [0, 0, 1, 0], [], []>} : vector<16x16xf32>, vector<16x16xf32>, vector<16x16xf32> -> vector<16x16xf32>
    %94 = vector.broadcast %21 : vector<1x16xf32> to vector<16x16xf32>
    %95 = arith.addf %93, %94 : vector<16x16xf32>
    %96 = arith.subf %95, %92 : vector<16x16xf32>
    %cst_47 = arith.constant dense<0.000000e+00> : vector<16x16xf32>
    %97 = tpu.matmul %22, %96, %cst_47 {dimension_numbers = #tpu.dot_dimension_numbers<[1], [0], [0], [1], [0, 0, 1, 1], [], []>} : vector<16x16xf32>, vector<16x16xf32>, vector<16x16xf32> -> vector<16x16xf32>
    %cst_48 = arith.constant 0.000000e+00 : f32
    %98 = vector.broadcast %cst_48 : f32 to vector<16x16xf32>
    %99 = arith.maximumf %97, %98 : vector<16x16xf32>
    %cst_49 = arith.constant dense<0.000000e+00> : vector<32x16xf32>
    %100 = tpu.matmul %23, %99, %cst_49 {dimension_numbers = #tpu.dot_dimension_numbers<[1], [0], [0], [1], [0, 0, 1, 1], [], []>} : vector<32x16xf32>, vector<16x16xf32>, vector<32x16xf32> -> vector<32x16xf32>
    %101 = vector.extract_strided_slice %0 {offsets = [0, 512], sizes = [32, 256], strides = [1, 1]} : vector<32x1024xf32> to vector<32x256xf32>
    %cst_50 = arith.constant dense<0.000000e+00> : vector<32x256xf32>
    %102 = tpu.matmul %100, %91, %cst_50 {dimension_numbers = #tpu.dot_dimension_numbers<[1], [0], [0], [1], [0, 0, 1, 1], [], []>} : vector<32x16xf32>, vector<16x256xf32>, vector<32x256xf32> -> vector<32x256xf32>
    %103 = arith.addf %101, %102 : vector<32x256xf32>
    %c0_51 = arith.constant 0 : index
    %c512 = arith.constant 512 : index
    %104 = vector.load %arg10[%c0_51, %c512] : memref<32x1024xf32, #tpu.memory_space<vmem>>, vector<32x256xf32>
    tpu.vector_store %arg10[%c0_51, %c512], %103 {strides = array<i32>} : memref<32x1024xf32, #tpu.memory_space<vmem>>, vector<32x256xf32>,
    %105 = vector.extract_strided_slice %15 {offsets = [0, 768], sizes = [16, 256], strides = [1, 1]} : vector<16x1024xf32> to vector<16x256xf32>
    %106 = vector.extract_strided_slice %16 {offsets = [0, 768], sizes = [16, 256], strides = [1, 1]} : vector<16x1024xf32> to vector<16x256xf32>
    %107 = vector.extract_strided_slice %18 {offsets = [0, 768], sizes = [16, 256], strides = [1, 1]} : vector<16x1024xf32> to vector<16x256xf32>
    %cst_52 = arith.constant dense<0.000000e+00> : vector<16x16xf32>
    %108 = tpu.matmul %107, %19, %cst_52 {dimension_numbers = #tpu.dot_dimension_numbers<[1], [0], [0], [1], [0, 0, 1, 1], [], []>} : vector<16x256xf32>, vector<256x16xf32>, vector<16x16xf32> -> vector<16x16xf32>
    %cst_53 = arith.constant dense<0.000000e+00> : vector<16x256xf32>
    %109 = tpu.matmul %108, %106, %cst_53 {dimension_numbers = #tpu.dot_dimension_numbers<[0], [0], [1], [1], [0, 1, 1, 1], [], []>} : vector<16x16xf32>, vector<16x256xf32>, vector<16x256xf32> -> vector<16x256xf32>
    %cst_54 = arith.constant dense<0xFF800000> : vector<256xf32>
    %110 = vector.multi_reduction <maximumf>, %109, %cst_54 [0] : vector<16x256xf32> to vector<256xf32>
    %111 = vector.shape_cast %110 : vector<256xf32> to vector<1x256xf32>
    %112 = vector.broadcast %111 : vector<1x256xf32> to vector<16x256xf32>
    %113 = arith.subf %109, %112 : vector<16x256xf32>
    %114 = math.exp %113 : vector<16x256xf32>
    %cst_55 = arith.constant dense<0.000000e+00> : vector<256xf32>
    %115 = vector.multi_reduction <add>, %114, %cst_55 [0] : vector<16x256xf32> to vector<256xf32>
    %116 = vector.shape_cast %115 : vector<256xf32> to vector<1x256xf32>
    %117 = vector.broadcast %116 : vector<1x256xf32> to vector<16x256xf32>
    %118 = arith.divf %114, %117 : vector<16x256xf32>
    %cst_56 = arith.constant dense<0.000000e+00> : vector<16x16xf32>
    %119 = tpu.matmul %105, %118, %cst_56 {dimension_numbers = #tpu.dot_dimension_numbers<[1], [1], [0], [0], [0, 0, 1, 0], [], []>} : vector<16x256xf32>, vector<16x256xf32>, vector<16x16xf32> -> vector<16x16xf32>
    %cst_57 = arith.constant dense<0.000000e+00> : vector<16x16xf32>
    %120 = tpu.matmul %119, %20, %cst_57 {dimension_numbers = #tpu.dot_dimension_numbers<[1], [1], [0], [0], [0, 0, 1, 0], [], []>} : vector<16x16xf32>, vector<16x16xf32>, vector<16x16xf32> -> vector<16x16xf32>
    %121 = vector.broadcast %21 : vector<1x16xf32> to vector<16x16xf32>
    %122 = arith.addf %120, %121 : vector<16x16xf32>
    %123 = arith.subf %122, %119 : vector<16x16xf32>
    %cst_58 = arith.constant dense<0.000000e+00> : vector<16x16xf32>
    %124 = tpu.matmul %22, %123, %cst_58 {dimension_numbers = #tpu.dot_dimension_numbers<[1], [0], [0], [1], [0, 0, 1, 1], [], []>} : vector<16x16xf32>, vector<16x16xf32>, vector<16x16xf32> -> vector<16x16xf32>
    %cst_59 = arith.constant 0.000000e+00 : f32
    %125 = vector.broadcast %cst_59 : f32 to vector<16x16xf32>
    %126 = arith.maximumf %124, %125 : vector<16x16xf32>
    %cst_60 = arith.constant dense<0.000000e+00> : vector<32x16xf32>
    %127 = tpu.matmul %23, %126, %cst_60 {dimension_numbers = #tpu.dot_dimension_numbers<[1], [0], [0], [1], [0, 0, 1, 1], [], []>} : vector<32x16xf32>, vector<16x16xf32>, vector<32x16xf32> -> vector<32x16xf32>
    %128 = vector.extract_strided_slice %0 {offsets = [0, 768], sizes = [32, 256], strides = [1, 1]} : vector<32x1024xf32> to vector<32x256xf32>
    %cst_61 = arith.constant dense<0.000000e+00> : vector<32x256xf32>
    %129 = tpu.matmul %127, %118, %cst_61 {dimension_numbers = #tpu.dot_dimension_numbers<[1], [0], [0], [1], [0, 0, 1, 1], [], []>} : vector<32x16xf32>, vector<16x256xf32>, vector<32x256xf32> -> vector<32x256xf32>
    %130 = arith.addf %128, %129 : vector<32x256xf32>
    %c0_62 = arith.constant 0 : index
    %c768 = arith.constant 768 : index
    %131 = vector.load %arg10[%c0_62, %c768] : memref<32x1024xf32, #tpu.memory_space<vmem>>, vector<32x256xf32>
    tpu.vector_store %arg10[%c0_62, %c768], %130 {strides = array<i32>} : memref<32x1024xf32, #tpu.memory_space<vmem>>, vector<32x256xf32>,
    return
  }
  func.func @transform_0(%arg0: i32) -> (i32, i32) {
    %c0_i32 = arith.constant 0 : i32
    %c0_i32_0 = arith.constant 0 : i32
    return %c0_i32, %arg0 : i32, i32
  }
  func.func @transform_1(%arg0: i32) -> (i32, i32) {
    %c0_i32 = arith.constant 0 : i32
    %c0_i32_0 = arith.constant 0 : i32
    return %c0_i32, %arg0 : i32, i32
  }
  func.func @transform_2(%arg0: i32) -> (i32, i32) {
    %c0_i32 = arith.constant 0 : i32
    %c0_i32_0 = arith.constant 0 : i32
    %c0_i32_1 = arith.constant 0 : i32
    return %c0_i32, %c0_i32_0 : i32, i32
  }
  func.func @transform_3(%arg0: i32) -> (i32, i32) {
    %c0_i32 = arith.constant 0 : i32
    %c0_i32_0 = arith.constant 0 : i32
    %c0_i32_1 = arith.constant 0 : i32
    return %c0_i32, %c0_i32_0 : i32, i32
  }
  func.func @transform_4(%arg0: i32) -> (i32, i32) {
    %c0_i32 = arith.constant 0 : i32
    %c0_i32_0 = arith.constant 0 : i32
    %c0_i32_1 = arith.constant 0 : i32
    return %c0_i32, %c0_i32_0 : i32, i32
  }
  func.func @transform_5(%arg0: i32) -> (i32, i32) {
    %c0_i32 = arith.constant 0 : i32
    %c0_i32_0 = arith.constant 0 : i32
    %c0_i32_1 = arith.constant 0 : i32
    return %c0_i32, %c0_i32_0 : i32, i32
  }
  func.func @transform_6(%arg0: i32) -> (i32, i32) {
    %c0_i32 = arith.constant 0 : i32
    %c0_i32_0 = arith.constant 0 : i32
    %c0_i32_1 = arith.constant 0 : i32
    return %c0_i32, %c0_i32_0 : i32, i32
  }
  func.func @transform_7(%arg0: i32) -> (i32, i32) {
    %c0_i32 = arith.constant 0 : i32
    %c0_i32_0 = arith.constant 0 : i32
    %c0_i32_1 = arith.constant 0 : i32
    return %c0_i32, %c0_i32_0 : i32, i32
  }
  func.func @transform_8(%arg0: i32) -> (i32, i32) {
    %c0_i32 = arith.constant 0 : i32
    %c0_i32_0 = arith.constant 0 : i32
    %c0_i32_1 = arith.constant 0 : i32
    return %c0_i32, %c0_i32_0 : i32, i32
  }
  func.func @transform_9(%arg0: i32) -> (i32, i32) {
    %c0_i32 = arith.constant 0 : i32
    %c0_i32_0 = arith.constant 0 : i32
    return %c0_i32, %arg0 : i32, i32
  }
}

</mosaic_0001>

<bundles_post_ra>
// kernel: tpu_custom_call.1
= control target key start
LH: loop header
LB: loop body
LE: loop exit
PB: predicated region body
PF: predicated region fallthrough
CT: control target
= control target key end

     0   :  { %14 = vsyncpa [#allocation3], 0  ;;  %s5683_s0 = inlined_call_operand.hbm [shape: f32[32,2048], index: 0, kind: input, shape index: {}]   ;;  %s5684_s1 = inlined_call_operand.vmem [shape: f32[2,2048], index: 1, kind: input, shape index: {}]   ;;  %s5685_s2 = inlined_call_operand.vmem [shape: f32[32,32], index: 2, kind: input, shape index: {}]   ;;  %s5686_s3 = inlined_call_operand.vmem [shape: f32[32,1], index: 3, kind: input, shape index: {}]   ;;  %s5687_s4 = inlined_call_operand.vmem [shape: f32[256,16], index: 4, kind: input, shape index: {}]   ;;  %s5688_s5 = inlined_call_operand.vmem [shape: f32[16,16], index: 5, kind: input, shape index: {}]   ;;  %s5689_s6 = inlined_call_operand.vmem [shape: f32[1,16], index: 6, kind: input, shape index: {}]   ;;  %s5690_s7 = inlined_call_operand.vmem [shape: f32[16,16], index: 7, kind: input, shape index: {}]   ;;  %s5691_s8 = inlined_call_operand.vmem [shape: f32[32,16], index: 8, kind: input, shape index: {}]   ;;  %s5692_s9 = inlined_call_operand.hbm [shape: f32[32,2048], index: 9, kind: output, shape index: {}]  }
   0x1   :  { %16 = vsyncpa [#allocation3 + $0x1], 0 }
   0x2   :  { %17 = vsyncpa [#allocation4], 0 }
   0x3   :  { %19 = vsyncpa [#allocation4 + $0x1], 0  ;;  %s4748_s30 = smov 0   ;;  %s4750_s10 = smov 0  }
   0x4   :  { %s4752_s11 = smov 0   ;;  %s4754_s12 = smov 0  }
   0x5 LB: > { %s4769_s13 = sadd.s32 4294967295, %s4686_s12   ;;  %s3779_s14 = sadd.s32 4294967294, %s4686_s12   ;;  %s4686_s12 = sphi %s4754_s12, %s5791_s12   ;;  %s4682_s11 = sphi %s4752_s11, %s5790_s11   ;;  %s4678_s10 = sphi %s4750_s10, %s5789_s10   ;;  %s4674_s30 = sphi %s4748_s30, %s5788_s30  }
   0x6   : > { %s4773_s15 = sadd.s32 1, %s4686_s12   ;;  %s32_s16 = sadd.s32 1, %s4682_s11 }
   0x7   : > { %s29_s17 = ssub.s32 %s4686_s12, %s4773_s15  ;;  %p39_p0 = scmp.ne.s32.totalorder %s4682_s11, %s4678_s10 }
   0x8   : > { %p30_p1 = scmp.eq.s32.totalorder %s29_s17, 0  ;;  %p40_p2 = scmp.eq.s32.totalorder %s4686_s12, 0 }
   0x9   : > { %p45_p3 = scmp.ne.s32.totalorder %s4678_s10, %s4674_s30  ;;  %p46_p4 = scmp.eq.s32.totalorder %s4769_s13, 0 }
   0xa   : > { %s4785_s18 = scalar_select %p30_p1, %s4682_s11, %s32_s16  }
   0xb   : > { %p4787_p5 = por %p40_p2, %p39_p0  ;;  %p4791_p6 = por %p46_p4, %p45_p3 }
   0xc   : > { %p242_p7 = scmp.eq.s32.totalorder %s4769_s13, 1  ;;  %p248_p8 = scmp.eq.s32.totalorder %s3779_s14, 1 }
   0xd   : > { %p4460_p10 = scmp.lt.s32.totalorder %s4686_s12, 2  ;;  %s289_s23 = sand.u32 1, %s4682_s11  }
   0xe   : > { %p4798_p11 = por %p242_p7, %p39_p0  ;;  %p4802_p12 = por %p248_p8, %p45_p3 }
   0xf   : > { %s3878_s24 = sshll.u32 %s4686_s12, 10  ;;  %s3782_s25 = sshll.u32 %s289_s23, 8 }
  0x10   : > { %s5712_s21 = scalar_select %p4798_p11, 1, 0 }
  0x11   : > { %s5713_s22 = scalar_select %p4802_p12, 1, 0 }
  0x12   : > { %s4811_s28 = scalar_lea.hbm %s5683_s0, %s3878_s24  ;;  %s293_s29 = scalar_lea.vmem [#allocation2], %s3782_s25 }
  0x13   : > { %s300_s14 = sshll.u32 %s293_s29, 4  ;;  %p4815_p13 = pnand %p4460_p10, %p4787_p5  ;;  %s4819_s14 = int_to_ptr.vmem [resolvable:$true] %s300_s14 }
  0x14   : > { %s4822_s17 = scalar_lea.sflag [#allocation3], %s289_s23  ;;  %s4590_s24 = scalar_lea.hbm %s4811_s28, 4096 }
  0x15   : > { %p4591_p1 = scmp.ne.s32.totalorder %s4811_s28, %s4590_s24  ;;  %p4592_p2 = pneg %p4815_p13 }
  0x16   : > { %s4595_s26 = scalar_lea.hbm %s5683_s0, 8192  ;;  %p4596_p5 = scmp.lt.u32.totalorder %s4811_s28, %s5683_s0 }
  0x17   : > { %p4593_p3 = pnand %p4592_p2, %p4591_p1  ;;  %p4597_p7 = scmp.lt.u32.totalorder %s4595_s26, %s4590_s24 }
  0x18   : > { %p4599_p10 = scmp.lt.u32.totalorder %s4590_s24, %s4811_s28 }
  0x19   : > { %p4594_p4 = pneg %p4593_p3  ;;  %p4598_p8 = por %p4597_p7, %p4596_p5 }
  0x1b   : > { %p4600_p9 = por %p4599_p10, %p4598_p8 }
  0x1d   : > { %p4601_p0 = pnand %p4600_p9, %p4594_p4 }
  0x1f   : > { %4604 = shalt.err (!%p4601_p0)
}
  0x20   : > { %s4605_s23 = scalar_lea.vmem %s4819_s14, 4096  ;;  %s4688_s19 = smov [#allocation2]  }
  0x21   : > { %p4606_p1 = scmp.ne.s32.totalorder %s4819_s14, %s4605_s23  ;;  %s4610_s25 = sshll.u32 %s4688_s19, 4  ;;  %s4611_s25 = int_to_ptr.vmem [resolvable:$false] %s4610_s25 }
  0x22   : > { %s4612_s27 = scalar_lea.vmem %s4611_s25, 8192  ;;  %p4613_p11 = scmp.lt.s32.totalorder %s4819_s14, %s4611_s25 }
  0x23   : > { %p4608_p3 = pnand %p4606_p1, %p4592_p2  ;;  %p4614_p5 = scmp.lt.s32.totalorder %s4612_s27, %s4605_s23 }
  0x25   : > { %p4609_p12 = pneg %p4608_p3  ;;  %p4615_p7 = por %p4614_p5, %p4613_p11 }
  0x27   : > { %p4616_p8 = pnand %p4615_p7, %p4609_p12 }
  0x29   : > { %4619 = shalt.err (!%p4616_p8)
}
  0x2a   : > { %s4689_s24 = smov 2048   ;;  %s4690_s26 = smov 1024  }
  0x2b   : > { %s4691_s29 = smov 64   ;;  %p317_p9 = scmp.lt.s32.totalorder %s4686_s12, 3 }
  0x2c   : > { %4455 = dma.hbm_to_vmem [thread:$0]  (!%p4815_p13), %s4811_s28, 4096, %s4819_s14, %s4822_s17, %s4689_s24, %s4690_s26, %s4691_s29  }
  0x2d   : > { %p5715_p0 = scmp.ge.s32.totalorder %s4686_s12, 1 }
  0x2f   : > { %p318_p2 = pnand %p5715_p0, %p317_p9 }
  0x31   : > { %321 = sbr.rel (%p318_p2) target bundleno = 6006 (0x1776), region = 56 }
  0x38   : > { %s4854_s23 = sand.u32 1, %s4678_s10  }
  0x39   : > { %s5694_s19 = sshll.u32 %s4854_s23, 8  ;;  %s324_s25 = scalar_lea.sflag [#allocation3], %s4854_s23 }
  0x3a   : > { %s4860_s27 = scalar_lea.vmem [#allocation2], %s5694_s19 }
  0x3b   : > { %4665 = dma.done.wait (%p4791_p6), %s324_s25, 4096  }
  0x3c   : > { %4667 = vsyncadd (%p4791_p6), %s324_s25, 4294963200  ;;  %v5695_v0 = vmov 0.0   ;;  %v5697_v1 = vmov 0   ;;  %v4870_v2 = vld [vmem:[%s4860_s27 + $0x8] sm:$0xff]  ;;  %v378_v4 = vld [vmem:[%s4860_s27 + $0x18] sm:$0xff]  ;;  %vm457_vm0 = vcmask 261120  }
  0x3d   : > { %534 = vmatprep.mubr.f32.mxu0 %v5695_v0  ;;  %623 = vmatprep.mubr.f32.mxu1 %v5695_v0  ;;  %v4873_v3 = vld [vmem:[%s4860_s27 + $0x48] sm:$0xff]  ;;  %v386_v6 = vld [vmem:[%s4860_s27 + $0x58] sm:$0xff]  ;;  %v4880_v7 = vld [vmem:[%s4860_s27] sm:$0xff]  ;;  %s3788_s19 = sshll.u32 %s4769_s13, 3  ;;  %vm1064_vm1 = vcmask 130048   ;;  %s5751_s17 = sshll.u32 %s4854_s23, 8 }
  0x3e   : > { %4502 = vset.pattern.permute.xlu0 %v5697_v1  ;;  %v4184_v5 = vpack.c.bf16 %v4873_v3, %v4870_v2  ;;  %v4883_v8 = vld [vmem:[%s4860_s27 + $0x40] sm:$0xff]  ;;  %v4192_v9 = vpack.c.bf16 %v386_v6, %v378_v4  ;;  %v377_v11 = vld [vmem:[%s4860_s27 + $0x10] sm:$0xff]  ;;  %v4890_v13 = vld [vmem:[%s4860_s27 + $0x88] sm:$0xff]  ;;  %p369_p6 = scmp.lt.s32.totalorder %s3788_s19, 15  ;;  %s3879_s20 = sshll.u32 %s4769_s13, 10 }
  0x3f   : > { %v4186_v10 = vpack.c.bf16 %v4883_v8, %v4880_v7  ;;  %v385_v12 = vld [vmem:[%s4860_s27 + $0x50] sm:$0xff]  ;;  %v4893_v15 = vld [vmem:[%s4860_s27 + $0xc8] sm:$0xff]  ;;  %v394_v16 = vld [vmem:[%s4860_s27 + $0x98] sm:$0xff]  ;;  %s5633_s16 = scalar_lea.hbm %s5692_s9, %s3879_s20  ;;  %s3681_s13 = scalar_lea.sflag [#allocation4], %s4854_s23 }
  0x40   : > { %4185 = vmatprep.subr.bf16.mxu0 %v4184_v5  ;;  %v4194_v14 = vpack.c.bf16 %v385_v12, %v377_v11  ;;  %v402_v17 = vld [vmem:[%s4860_s27 + $0xd8] sm:$0xff]  ;;  %4193 = vmatprep.subr.bf16.mxu1 %v4192_v9  ;;  %v4188_v18 = vpack.c.bf16 %v4893_v15, %v4890_v13  ;;  %v4900_v20 = vld [vmem:[%s4860_s27 + $0x80] sm:$0xff]  ;;  %v393_v22 = vld [vmem:[%s4860_s27 + $0x90] sm:$0xff]  ;;  %s5793_s19 = smov (!%p369_p6, %s3788_s19), 15  ;;  %p5785_p12 = scmp.ne.s32.totalorder %s5712_s21, 0 }
  0x41   : > { %4187 = vmatpush1.bf16.msra.mxu0 %v4186_v10  ;;  %v4196_v19 = vpack.c.bf16 %v402_v17, %v394_v16  ;;  %v4903_v21 = vld [vmem:[%s4860_s27 + $0xc0] sm:$0xff]  ;;  %v401_v24 = vld [vmem:[%s4860_s27 + $0xd0] sm:$0xff]  ;;  %v380_v27 = vld [vmem:[%s4860_s27 + $0x28] sm:$0xff]  ;;  %s3789_s14 = sshll.u32 %s5793_s19, 1  ;;  %s4694_s26 = smov [#allocation5]  }
  0x42   : > { %4195 = vmatpush1.bf16.msra.mxu1 %v4194_v14  ;;  %v4190_v23 = vpack.c.bf16 %v4903_v21, %v4900_v20  ;;  %4189 = vmatprep.subr.bf16.mxu0 %v4188_v18  ;;  %v4198_v25 = vpack.c.bf16 %v401_v24, %v393_v22  ;;  %v4912_v26 = vld [vmem:[%s5685_s2] sm:$0xff]  ;;  %v388_v28 = vld [vmem:[%s4860_s27 + $0x68] sm:$0xff]  ;;  %v382_v30 = vld [vmem:[%s4860_s27 + $0x38] sm:$0xff]  ;;  %s372_s24 = scalar_lea.vmem %s5684_s1, %s3789_s14  ;;  %s4624_s29 = sshll.u32 %s4694_s26, 4  ;;  %s4625_s29 = int_to_ptr.vmem [resolvable:$false] %s4624_s29 }
  0x43   : > { %4197 = vmatprep.subr.bf16.mxu1 %v4196_v19  ;;  %v4200_v29 = vpack.c.bf16 %v388_v28, %v380_v27  ;;  %v390_v31 = vld [vmem:[%s4860_s27 + $0x78] sm:$0xff]  ;;  %v379_v32 = vld [vmem:[%s4860_s27 + $0x20] sm:$0xff]  ;;  %v381_v35 = vld [vmem:[%s4860_s27 + $0x30] sm:$0xff]  ;;  %s4626_s25 = scalar_lea.vmem %s4625_s29, 8192 }
  0x44   : > { %v4208_v33 = vpack.c.bf16 %v390_v31, %v382_v30  ;;  %v387_v34 = vld [vmem:[%s4860_s27 + $0x60] sm:$0xff]  ;;  %v389_v36 = vld [vmem:[%s4860_s27 + $0x70] sm:$0xff]  ;;  %v396_v38 = vld [vmem:[%s4860_s27 + $0xa8] sm:$0xff] }
  0x45   : > { %4191 = vmatpush1.bf16.msra.mxu0 %v4190_v23  ;;  %v4202_v37 = vpack.c.bf16 %v387_v34, %v379_v32  ;;  %v404_v39 = vld [vmem:[%s4860_s27 + $0xe8] sm:$0xff]  ;;  %v4210_v40 = vpack.c.bf16 %v389_v36, %v381_v35  ;;  %v398_v42 = vld [vmem:[%s4860_s27 + $0xb8] sm:$0xff]  ;;  %v395_v44 = vld [vmem:[%s4860_s27 + $0xa0] sm:$0xff] }
  0x46   : > { %4199 = vmatpush1.bf16.msra.mxu1 %v4198_v25  ;;  %4201 = vmatprep.subr.bf16.mxu0 %v4200_v29  ;;  %v4204_v41 = vpack.c.bf16 %v404_v39, %v396_v38  ;;  %v406_v43 = vld [vmem:[%s4860_s27 + $0xf8] sm:$0xff]  ;;  %v403_v46 = vld [vmem:[%s4860_s27 + $0xe0] sm:$0xff]  ;;  %v397_v47 = vld [vmem:[%s4860_s27 + $0xb0] sm:$0xff] }
  0x47   : > { %4209 = vmatprep.subr.bf16.mxu1 %v4208_v33  ;;  %v4212_v45 = vpack.c.bf16 %v406_v43, %v398_v42  ;;  %v405_v48 = vld [vmem:[%s4860_s27 + $0xf0] sm:$0xff]  ;;  %v430_v49 = vld [vmem:[%s5685_s2 + $0x8] sm:$0xff]  ;;  %v4206_v50 = vpack.c.bf16 %v403_v46, %v395_v44  ;;  %v932_v51 = vld [vmem:[%s5687_s4 + $0x80] sm:$0xff] }
  0x48   : > { %3792 = vmatmul.mubr.msk.f32.vlgmr.msra.gmra.mrb[0].mxu0 %vm457_vm0, %v4912_v26  ;;  %v933_v52 = vld [vmem:[%s5687_s4 + $0x88] sm:$0xff]  ;;  %v4214_v53 = vpack.c.bf16 %v405_v48, %v397_v47  ;;  %v435_v54 = vld [vmem:[%s5686_s3 + $0x10] sm:$0xff]  ;;  %v436_v57 = vld [vmem:[%s5686_s3 + $0x18] sm:$0xff]  ;;  %v828_v48 = vlaneseq }
  0x49   : > { %3796 = vmatmul.mubr.msk.f32.vlgmr.msra.gmra.mrb[0].mxu1 %vm457_vm0, %v4912_v26  ;;  %540 = vmatprep.mubr.f32.mxu0 %v5695_v0  ;;  %v4949_v55 = vpack.c.bf16 %v933_v52, %v932_v51  ;;  %v431_v56 = vld [vmem:[%s5685_s2 + $0x10] sm:$0xff]  ;;  %v432_v58 = vld [vmem:[%s5685_s2 + $0x18] sm:$0xff]  ;;  %v916_v59 = vld [vmem:[%s5687_s4] sm:$0xff] }
  0x4a   : > { %629 = vmatprep.mubr.f32.mxu1 %v5695_v0  ;;  %4203 = vmatpush1.bf16.msra.mxu0 %v4202_v37  ;;  %v917_v60 = vld [vmem:[%s5687_s4 + $0x8] sm:$0xff]  ;;  %v433_v61 = vld [vmem:[%s5686_s3] sm:$0xff]  ;;  %v934_v62 = vld [vmem:[%s5687_s4 + $0x90] sm:$0xff] }
  0x4b   : > { %4211 = vmatpush1.bf16.msra.mxu1 %v4210_v40  ;;  %4205 = vmatprep.subr.bf16.mxu0 %v4204_v41  ;;  %v935_v63 = vld [vmem:[%s5687_s4 + $0x98] sm:$0xff]  ;;  %v4987_v4 = vpack.c.bf16 %v917_v60, %v916_v59  ;;  %v918_v6 = vld [vmem:[%s5687_s4 + $0x10] sm:$0xff]  ;;  %v936_v10 = vld [vmem:[%s5687_s4 + $0xa0] sm:$0xff] }
  0x4c   : > { %3793 = vmatmul.mubr.msk.f32.gmra.mrb[2].mxu0 %vm457_vm0, %v430_v49  ;;  %4213 = vmatprep.subr.bf16.mxu1 %v4212_v45  ;;  %v4989_v5 = vpack.c.bf16 %v935_v63, %v934_v62  ;;  %v919_v9 = vld [vmem:[%s5687_s4 + $0x18] sm:$0xff]  ;;  %v937_v11 = vld [vmem:[%s5687_s4 + $0xa8] sm:$0xff]  ;;  %v920_v16 = vld [vmem:[%s5687_s4 + $0x20] sm:$0xff] }
  0x4d   : > { %3797 = vmatmul.mubr.msk.f32.gmra.mrb[2].mxu1 %vm457_vm0, %v430_v49  ;;  %546 = vmatprep.mubr.f32.mxu0 %v5695_v0  ;;  %v5010_v12 = vpack.c.bf16 %v919_v9, %v918_v6  ;;  %v5013_v14 = vpack.c.bf16 %v937_v11, %v936_v10  ;;  %v921_v17 = vld [vmem:[%s5687_s4 + $0x28] sm:$0xff]  ;;  %v938_v18 = vld [vmem:[%s5687_s4 + $0xb0] sm:$0xff]  ;;  %v939_v19 = vld [vmem:[%s5687_s4 + $0xb8] sm:$0xff] }
  0x4e   : > { %635 = vmatprep.mubr.f32.mxu1 %v5695_v0  ;;  %4207 = vmatpush1.bf16.msra.mxu0 %v4206_v50  ;;  %v5032_v22 = vpack.c.bf16 %v921_v17, %v920_v16  ;;  %v5035_v23 = vpack.c.bf16 %v939_v19, %v938_v18  ;;  %v922_v24 = vld [vmem:[%s5687_s4 + $0x30] sm:$0xff]  ;;  %v923_v25 = vld [vmem:[%s5687_s4 + $0x38] sm:$0xff]  ;;  %v941_v27 = vld [vmem:[%s5687_s4 + $0xc8] sm:$0xff]  ;;  %v829_v50 = vshrl.u32 %v828_v48, 7 }
  0x4f   : > { %4215 = vmatpush1.bf16.msra.mxu1 %v4214_v53  ;;  %449 = vperm.xlu0 %4502, %v435_v54   ;;  %v5054_v28 = vpack.c.bf16 %v923_v25, %v922_v24  ;;  %v407_v30 = vld [vmem:[%s372_s24] sm:$0xff]  ;;  %v408_v34 = vld [vmem:[%s372_s24 + $0x8] sm:$0xff]  ;;  %v942_v43 = vld [vmem:[%s5687_s4 + $0xd0] sm:$0xff]  ;;  %s5387_s24 = scalar_lea.vmem [#allocation5], %s5751_s17 }
  0x50   : > { %3794 = vmatmul.mubr.msk.f32.gmra.mrb[4].mxu0 %vm457_vm0, %v431_v56  ;;  %4217 = vmatprep.subr.bf16.mxu0 %v4949_v55  ;;  %v411_v31 = vrot.slane %v407_v30, 7  ;;  %v412_v36 = vrot.slane %v408_v34, 7  ;;  %v924_v39 = vld [vmem:[%s5687_s4 + $0x40] sm:$0xff]  ;;  %v925_v40 = vld [vmem:[%s5687_s4 + $0x48] sm:$0xff]  ;;  %v943_v44 = vld [vmem:[%s5687_s4 + $0xd8] sm:$0xff]  ;;  %v842_v60 = vsub.s32 7, %v829_v50 }
  0x51   : > { %3798 = vmatmul.mubr.msk.f32.gmra.mrb[4].mxu1 %vm457_vm0, %v431_v56  ;;  %552 = vmatprep.mubr.f32.mxu0 %v5695_v0  ;;  %v5074_v42 = vpack.c.bf16 %v925_v40, %v924_v39  ;;  %v5083_v45 = vpack.c.bf16 %v943_v44, %v942_v43  ;;  %v926_v46 = vld [vmem:[%s5687_s4 + $0x50] sm:$0xff]  ;;  %v927_v47 = vld [vmem:[%s5687_s4 + $0x58] sm:$0xff]  ;;  %v944_v51 = vld [vmem:[%s5687_s4 + $0xe0] sm:$0xff]  ;;  %s3694_s28 = sshll.u32 %s5387_s24, 4  ;;  %s5636_s28 = int_to_ptr.vmem [resolvable:$true] %s3694_s28 }
  0x52   : > { %641 = vmatprep.mubr.f32.mxu1 %v5695_v0  ;;  %v415_v32 = vsub.f32 %v407_v30, %v411_v31  ;;  %v416_v38 = vsub.f32 %v408_v34, %v412_v36  ;;  %v945_v52 = vld [vmem:[%s5687_s4 + $0xe8] sm:$0xff]  ;;  %v928_v54 = vld [vmem:[%s5687_s4 + $0x60] sm:$0xff]  ;;  %v946_v6 = vld [vmem:[%s5687_s4 + $0xf0] sm:$0xff]  ;;  %s4620_s17 = scalar_lea.vmem %s5636_s28, 4096  ;;  %p4627_p10 = scmp.lt.s32.totalorder %s5636_s28, %s4625_s29 }
  0x53   : > { %454 = vperm.xlu0 %4502, %v436_v57   ;;  %v5101_v53 = vpack.c.bf16 %v945_v52, %v944_v51  ;;  %v947_v9 = vld [vmem:[%s5687_s4 + $0xf8] sm:$0xff]  ;;  %v930_v16 = vld [vmem:[%s5687_s4 + $0x70] sm:$0xff]  ;;  %vm5270_vm2 = vmpackc.low %vm1064_vm1, %vm1064_vm1  ;;  %p4621_p11 = scmp.ne.s32.totalorder %s5636_s28, %s4620_s17  ;;  %p4628_p1 = scmp.lt.s32.totalorder %s4626_s25, %s4620_s17 }
  0x54   : > { %3795 = vmatmul.mubr.msk.f32.gmra.mrb[6].mxu0 %vm457_vm0, %v432_v58  ;;  %v3790_v33 = vmul.f32 -1.442695, %v415_v32  ;;  %v3791_v41 = vmul.f32 -1.442695, %v416_v38  ;;  %v5119_v11 = vpack.c.bf16 %v947_v9, %v946_v6  ;;  %v931_v17 = vld [vmem:[%s5687_s4 + $0x78] sm:$0xff] }
  0x55   : > { %3799 = vmatmul.mubr.msk.f32.gmra.mrb[6].mxu1 %vm457_vm0, %v432_v58  ;;  %712 = vmatprep.mubr.f32.mxu0 %v5695_v0  ;;  %v5127_v24 = vpack.c.bf16 %v931_v17, %v930_v16  ;;  %p4622_p13 = pnand %p4621_p11, %p5785_p12  ;;  %p4629_p3 = por %p4628_p1, %p4627_p10 }
  0x56   : > { %801 = vmatprep.mubr.f32.mxu1 %v5695_v0  ;;  %4504 = vpow2.f32 %v3790_v33 }
  0x57   : > { %439 = vperm.xlu0 %4502, %v433_v61   ;;  %v830_v61 = vsub.s32 1, %v829_v50  ;;  %p4623_p4 = pneg %p4622_p13 }
  0x58   : > { %3800 = vmatmul.mubr.msk.f32.vlgmr.msra.gmra.mrb[8].mxu0 %vm457_vm0, %v4912_v26 }
  0x59   : > { %3804 = vmatmul.mubr.msk.f32.vlgmr.msra.gmra.mrb[8].mxu1 %vm457_vm0, %v4912_v26  ;;  %718 = vmatprep.mubr.f32.mxu0 %v5695_v0  ;;  %v940_v26 = vld [vmem:[%s5687_s4 + $0xc0] sm:$0xff]  ;;  %p4630_p5 = pnand %p4629_p3, %p4623_p4 }
  0x5a   : > { %807 = vmatprep.mubr.f32.mxu1 %v5695_v0  ;;  %4219 = vmatpush3.bf16.msra.mxu0 %v4987_v4  ;;  %v5057_v29 = vpack.c.bf16 %v941_v27, %v940_v26  ;;  %v834_v26 = vsub.s32 3, %v829_v50 }
  0x5b   : > { %4221 = vmatprep.subr.bf16.mxu0 %v4989_v5 }
  0x5c   : > { %3801 = vmatmul.mubr.msk.f32.gmra.mrb[10].mxu0 %vm457_vm0, %v430_v49 }
  0x5d   : > { %3805 = vmatmul.mubr.msk.f32.gmra.mrb[10].mxu1 %vm457_vm0, %v430_v49  ;;  %724 = vmatprep.mubr.f32.mxu0 %v5695_v0  ;;  %v5091_v49 = vpack.c.bf16 %v927_v47, %v926_v46 }
  0x5e   : > { %813 = vmatprep.mubr.f32.mxu1 %v5695_v0  ;;  %4223 = vmatpush3.bf16.msra.mxu0 %v5010_v12 }
  0x5f   : > { %4225 = vmatprep.subr.bf16.mxu0 %v5013_v14 }
  0x60   : > { %3802 = vmatmul.mubr.msk.f32.gmra.mrb[12].mxu0 %vm457_vm0, %v431_v56  ;;  %v4505_v35 = vpop.eup %4504 }
  0x61   : > { %3806 = vmatmul.mubr.msk.f32.gmra.mrb[12].mxu1 %vm457_vm0, %v431_v56  ;;  %730 = vmatprep.mubr.f32.mxu0 %v5695_v0  ;;  %v423_v37 = vadd.f32 1.0, %v4505_v35  ;;  %v929_v56 = vld [vmem:[%s5687_s4 + $0x68] sm:$0xff] }
  0x62   : > { %819 = vmatprep.mubr.f32.mxu1 %v5695_v0  ;;  %4227 = vmatpush3.bf16.msra.mxu0 %v5032_v22  ;;  %v5109_v59 = vpack.c.bf16 %v929_v56, %v928_v54 }
  0x63   : > { %4229 = vmatprep.subr.bf16.mxu0 %v5035_v23  ;;  %4506 = vrcp.f32 %v423_v37 }
  0x64   : > { %3803 = vmatmul.mubr.msk.f32.gmra.mrb[14].mxu0 %vm457_vm0, %v432_v58  ;;  %4508 = vpow2.f32 %v3791_v41 }
  0x65   : > { %3807 = vmatmul.mubr.msk.f32.gmra.mrb[14].mxu1 %vm457_vm0, %v432_v58  ;;  %v838_v58 = vsub.s32 5, %v829_v50 }
  0x66   : > { %4231 = vmatpush3.bf16.msra.mxu0 %v5054_v28  ;;  %1135 = vmatprep.mubr.f32.mxu1 %v5695_v0 }
  0x67   : > { %4233 = vmatprep.subr.bf16.mxu0 %v5057_v29 }
  0x6a   : > { %4235 = vmatpush3.bf16.msra.mxu0 %v5074_v42 }
  0x6b   : > { %4237 = vmatprep.subr.bf16.mxu0 %v5083_v45 }
  0x6d   : > { %v4507_v57 = vpop.eup %4506 }
  0x6e   : > { %4239 = vmatpush3.bf16.msra.mxu0 %v5091_v49  ;;  %v839_v62 = vrot.slane %v4507_v57, %v838_v58  ;;  %v843_v63 = vrot.slane %v4507_v57, %v842_v60  ;;  %v4509_v10 = vpop.eup %4508  ;;  %v835_v44 = vrot.slane %v4507_v57, %v834_v26  ;;  %v831_v48 = vrot.slane %v4507_v57, %v830_v61 }
  0x6f   : > { %4241 = vmatprep.subr.bf16.mxu0 %v5101_v53  ;;  %v424_v25 = vadd.f32 1.0, %v4509_v10 }
  0x70   : > { %v879_v18 = vrot.slane %v839_v62, %v830_v61  ;;  %v883_v19 = vrot.slane %v843_v63, %v830_v61  ;;  %v875_v54 = vrot.slane %v835_v44, %v830_v61 }
  0x71   : > { %4510 = vrcp.f32 %v424_v25 }
  0x72   : > { %4243 = vmatpush3.bf16.msra.mxu0 %v5109_v59 }
  0x73   : > { %4245 = vmatprep.subr.bf16.mxu0 %v5119_v11 }
  0x76   : > { %4247 = vmatpush3.bf16.msra.mxu0 %v5127_v24 }
  0x7b   : > { %v4511_v27 = vpop.eup %4510 }
  0x7c   : > { %v847_v30 = vrot.slane %v4511_v27, %v830_v61  ;;  %v855_v31 = vrot.slane %v4511_v27, %v838_v58  ;;  %v851_v32 = vrot.slane %v4511_v27, %v834_v26  ;;  %v859_v33 = vrot.slane %v4511_v27, %v842_v60 }
  0x7d   : > { %v871_v58 = vrot.slane %v831_v48, %v830_v61 }
  0x7e   : > { %v5131_v34 = vrot.slane %v847_v30, %v830_v61  ;;  %v5133_v35 = vrot.slane %v855_v31, %v830_v61  ;;  %v5135_v36 = vrot.slane %v851_v32, %v830_v61  ;;  %v5137_v37 = vrot.slane %v859_v33, %v830_v61 }
  0xce   : > { %v450_v50 = vpop.permute.xlu0 %449 }
  0xd2   : > { %v455_v16 = vpop.permute.xlu0 %454 }
 0x11b   : > { %v5139_v38 = vpop.f32.mrb[0].mxu0 }
 0x11c   : > { %v5141_v39 = vpop.f32.mrb[1].mxu0  ;;  %v5143_v40 = vpop.f32.mrb[0].mxu1 }
 0x11d   : > { %5716 = vst [vmem:[#allocation8_spill] sm:$0xff] %v5143_v40  ;;  %v5145_v41 = vpop.f32.mrb[1].mxu1 }
 0x11f   : > { %v5147_v43 = vpop.f32.mrb[2].mxu0 }
 0x120   : > { %v5149_v46 = vpop.f32.mrb[3].mxu0  ;;  %v5151_v47 = vpop.f32.mrb[2].mxu1 }
 0x121   : > { %5717 = vst [vmem:[#allocation9_spill] sm:$0xff] %v5151_v47  ;;  %v5153_v51 = vpop.f32.mrb[3].mxu1 }
 0x122   : > { %5718 = vst [vmem:[#allocation10_spill] sm:$0xff] %v5153_v51 }
 0x123   : > { %v548_v52 = vpop.f32.mrb[4].mxu0 }
 0x124   : > { %v549_v56 = vadd.f32 %v548_v52, %v450_v50  ;;  %v637_v60 = vpop.f32.mrb[4].mxu1  ;;  %v550_v62 = vpop.f32.mrb[5].mxu0 }
 0x125   : > { %v5155_v63 = vadd.f32 %v637_v60, %v450_v50  ;;  %v551_v6 = vadd.f32 %v550_v62, %v450_v50  ;;  %v639_v9 = vpop.f32.mrb[5].mxu1 }
 0x126   : > { %v5157_v10 = vadd.f32 %v639_v9, %v450_v50  ;;  %v900_v26 = vmul.f32 %v871_v58, %v549_v56 }
 0x127   : > { %v5160_v17 = vmul.f32 %v879_v18, %v5155_v63  ;;  %v901_v57 = vmul.f32 %v875_v54, %v551_v6  ;;  %v554_v25 = vpop.f32.mrb[6].mxu0 }
 0x128   : > { %v5163_v27 = vmul.f32 %v883_v19, %v5157_v10  ;;  %v555_v30 = vadd.f32 %v554_v25, %v455_v16  ;;  %v643_v61 = vpop.f32.mrb[6].mxu1  ;;  %v556_v31 = vpop.f32.mrb[7].mxu0 }
 0x129   : > { %v5165_v32 = vadd.f32 %v643_v61, %v455_v16  ;;  %v557_v33 = vadd.f32 %v556_v31, %v455_v16  ;;  %v645_v44 = vpop.f32.mrb[7].mxu1  ;;  %1021 = vmatprep.mubr.f32.mxu0 %v901_v57 }
 0x12a   : > { %v4250_v48 = vpack.c.bf16 %v555_v30, %v549_v56  ;;  %v5167_v52 = vadd.f32 %v645_v44, %v455_v16  ;;  %1022 = vmatmul.mubr.f32.vlgmr.msra.gmra.mrb[16].mxu0 %v900_v26  ;;  %v908_v1 = vmul.f32 %v871_v58, %v555_v30 }
 0x12b   : > { %v5170_v60 = vmul.f32 %v879_v18, %v5165_v32  ;;  %v909_v9 = vmul.f32 %v875_v54, %v557_v33  ;;  %v4248_v0 = vpack.c.bf16 %v557_v33, %v551_v6  ;;  %v5174_v25 = vpop.f32.mrb[8].mxu0 }
 0x12c   : > { %5719 = vst [vmem:[#allocation11_spill] sm:$0xff] %v5174_v25  ;;  %v5177_v61 = vmul.f32 %v883_v19, %v5167_v52  ;;  %v5181_v57 = vpop.f32.mrb[8].mxu1  ;;  %v5183_v26 = vpop.f32.mrb[9].mxu0 }
 0x12d   : > { %5720 = vst [vmem:[#allocation12_spill] sm:$0xff] %v5181_v57  ;;  %5721 = vst [vmem:[#allocation13_spill] sm:$0xff] %v5183_v26  ;;  %v5185_v18 = vpop.f32.mrb[9].mxu1  ;;  %1026 = vmatprep.mubr.f32.mxu0 %v909_v9  ;;  %4249 = vmatprep.subr.bf16.mxu1 %v4248_v0 }
 0x12e   : > { %5722 = vst [vmem:[#allocation14_spill] sm:$0xff] %v5185_v18  ;;  %1027 = vmatmul.mubr.f32.gmra.mrb[18].mxu0 %v908_v1  ;;  %4251 = vmatpush1.bf16.msra.mxu1 %v4250_v48 }
 0x12f   : > { %v5187_v54 = vpop.f32.mrb[10].mxu0 }
 0x130   : > { %5723 = vst [vmem:[#allocation15_spill] sm:$0xff] %v5187_v54  ;;  %v5189_v6 = vpop.f32.mrb[10].mxu1  ;;  %v5191_v58 = vpop.f32.mrb[11].mxu0 }
 0x131   : > { %5724 = vst [vmem:[#allocation16_spill] sm:$0xff] %v5189_v6  ;;  %5725 = vst [vmem:[#allocation17_spill] sm:$0xff] %v5191_v58  ;;  %v5193_v19 = vpop.f32.mrb[11].mxu1 }
 0x132   : > { %5726 = vst [vmem:[#allocation18_spill] sm:$0xff] %v5193_v19 }
 0x133   : > { %v726_v30 = vpop.f32.mrb[12].mxu0 }
 0x134   : > { %v5195_v31 = vadd.f32 %v726_v30, %v450_v50  ;;  %v815_v33 = vpop.f32.mrb[12].mxu1  ;;  %v728_v44 = vpop.f32.mrb[13].mxu0 }
 0x135   : > { %v5197_v62 = vadd.f32 %v815_v33, %v450_v50  ;;  %v5199_v56 = vadd.f32 %v728_v44, %v450_v50  ;;  %v817_v0 = vpop.f32.mrb[13].mxu1 }
 0x136   : > { %5727 = vst [vmem:[#allocation19_spill] sm:$0xff] %v5195_v31  ;;  %v5203_v1 = vmul.f32 %v5131_v34, %v5195_v31  ;;  %v5205_v48 = vadd.f32 %v817_v0, %v450_v50 }
 0x137   : > { %5728 = vst [vmem:[#allocation20_spill] sm:$0xff] %v5197_v62  ;;  %5729 = vst [vmem:[#allocation21_spill] sm:$0xff] %v5199_v56  ;;  %v5209_v9 = vmul.f32 %v5133_v35, %v5197_v62  ;;  %v5213_v30 = vmul.f32 %v5135_v36, %v5199_v56  ;;  %v732_v6 = vpop.f32.mrb[14].mxu0 }
 0x138   : > { %5730 = vst [vmem:[#allocation22_spill] sm:$0xff] %v5203_v1  ;;  %5731 = vst [vmem:[#allocation23_spill] sm:$0xff] %v5205_v48  ;;  %v5217_v33 = vmul.f32 %v5137_v37, %v5205_v48  ;;  %v5219_v44 = vadd.f32 %v732_v6, %v455_v16  ;;  %v821_v19 = vpop.f32.mrb[14].mxu1  ;;  %v734_v57 = vpop.f32.mrb[15].mxu0 }
 0x139   : > { %5732 = vst [vmem:[#allocation24_spill] sm:$0xff] %v5209_v9  ;;  %5733 = vst [vmem:[#allocation25_spill] sm:$0xff] %v5213_v30  ;;  %v5221_v18 = vadd.f32 %v821_v19, %v455_v16  ;;  %v5223_v50 = vadd.f32 %v734_v57, %v455_v16  ;;  %v823_v0 = vpop.f32.mrb[15].mxu1 }
 0x13a   : > { %5734 = vst [vmem:[#allocation26_spill] sm:$0xff] %v5217_v33  ;;  %5735 = vst [vmem:[#allocation27_spill] sm:$0xff] %v5219_v44  ;;  %v5227_v9 = vmul.f32 %v5131_v34, %v5219_v44  ;;  %v5231_v58 = vadd.f32 %v823_v0, %v455_v16  ;;  %v5743_v34 = vmov 0   ;;  %v5744_v16 = vmov 0.0  }
 0x13b   : > { %5736 = vst [vmem:[#allocation28_spill] sm:$0xff] %v5221_v18  ;;  %5737 = vst [vmem:[#allocation29_spill] sm:$0xff] %v5223_v50  ;;  %v5235_v6 = vmul.f32 %v5133_v35, %v5221_v18  ;;  %v5241_v57 = vmul.f32 %v5135_v36, %v5223_v50  ;;  %v434_v36 = vld [vmem:[%s5686_s3 + $0x8] sm:$0xff]  ;;  %v5255_v18 = vpop.permute.xlu0 %439 }
 0x13c   : > { %5738 = vst [vmem:[#allocation30_spill] sm:$0xff] %v5227_v9  ;;  %5739 = vst [vmem:[#allocation31_spill] sm:$0xff] %v5231_v58  ;;  %v5247_v33 = vmul.f32 %v5137_v37, %v5231_v58 }
 0x13d   : > { %5740 = vst [vmem:[#allocation32_spill] sm:$0xff] %v5235_v6  ;;  %5741 = vst [vmem:[#allocation33_spill] sm:$0xff] %v5241_v57 }
 0x13e   : > { %5742 = vst [vmem:[#allocation34_spill] sm:$0xff] %v5247_v33 }
 0x1fd   : > { %v3912_v0 = vpop.f32.mrb[16].mxu0 }
 0x1fe   : > { %v3913_v35 = vpop.f32.mrb[17].mxu0 }
 0x1ff   : > { %v3914_v54 = vadd.f32 %v3913_v35, %v3912_v0 }
 0x201   : > { %v3915_v6 = vpop.f32.mrb[18].mxu0  ;;  %1032 = vxpose.xlu1.b32.start [1/2] (short) (narrow) %v3914_v54, 16  ;;  %v539_v54 = vadd.f32 %v5141_v39, %v5255_v18 }
 0x202   : > { %v3916_v19 = vpop.f32.mrb[19].mxu0 }
 0x203   : > { %v3917_v62 = vadd.f32 %v3916_v19, %v3915_v6  ;;  %v949_v19 = vld [vmem:[%s5688_s5 + $0x8] sm:$0xff] }
 0x205   : > { %1033 = vxpose.xlu1.b32.end [2/2] (short) (narrow) %v3917_v62, 16  ;;  %v948_v62 = vld [vmem:[%s5688_s5] sm:$0xff] }
 0x206   : > { %v5274_v0 = vpack.c.bf16 %v949_v19, %v948_v62 }
 0x208   : > { %5748 = vst [vmem:[#allocation36_spill] sm:$0xff] %v5274_v0  ;;  %4258 = vmatprep.subr.msk.bf16.mxu0 %vm5270_vm2, %v5274_v0 }
 0x209   : > { %4261 = vmatpush3.bf16.xpose.msk.msra.mxu0 %vm5270_vm2, %v5274_v0 }
 0x223   : > { %4503 = vset.pattern.permute.xlu1 %v5743_v34  ;;  %v5745_v34 = vmov 0 }
 0x224   : > { %444 = vperm.xlu1 %4503, %v434_v36   ;;  %v5746_v34 = vsel %vm5270_vm2, 4294967295, %v5745_v34 }
 0x225   : > { %5747 = vst [vmem:[#allocation35_spill] sm:$0xff] %v5746_v34 }
 0x281   : > { %v1048_v37 = vpop.trf.xlu1 }
 0x282   : > { %3808 = vmatmul.mubr.msk.f32.vlgmr.msra.gmra.mrb[16].mxu1 %vm1064_vm1, %v1048_v37 }
 0x283   : > { %1141 = vmatprep.mubr.f32.mxu1 %v5744_v16 }
 0x285   : > { %v1049_v6 = vpop.trf.xlu1 }
 0x286   : > { %3809 = vmatmul.mubr.msk.f32.gmra.mrb[18].mxu1 %vm1064_vm1, %v1049_v6 }
 0x287   : > { %1258 = vmatprep.mubr.f32.mxu1 %v539_v54 }
 0x355   : > { %v1137_v39 = vpop.f32.mrb[16].mxu1 }
 0x356   : > { %v1139_v35 = vpop.f32.mrb[17].mxu1 }
 0x359   : > { %v1143_v36 = vpop.f32.mrb[18].mxu1 }
 0x35a   : > { %v1148_v37 = vmax.f32 %v1137_v39, %v1143_v36  ;;  %v1145_v54 = vpop.f32.mrb[19].mxu1 }
 0x35b   : > { %v1155_v6 = vmax.f32 %v1139_v35, %v1145_v54 }
 0x35c   : > { %v1149_v33 = vrot.slane %v1148_v37, 4 }
 0x35d   : > { %v1156_v48 = vrot.slane %v1155_v6, 4 }
 0x35e   : > { %v1150_v58 = vmax.f32 %v1148_v37, %v1149_v33 }
 0x35f   : > { %v1157_v25 = vmax.f32 %v1155_v6, %v1156_v48 }
 0x360   : > { %v1151_v62 = vrot.slane %v1150_v58, 2 }
 0x361   : > { %v1158_v19 = vrot.slane %v1157_v25, 2 }
 0x362   : > { %v1152_v26 = vmax.f32 %v1150_v58, %v1151_v62 }
 0x363   : > { %v1159_v31 = vmax.f32 %v1157_v25, %v1158_v19 }
 0x364   : > { %v1153_v44 = vrot.slane %v1152_v26, 1 }
 0x365   : > { %v1160_v9 = vrot.slane %v1159_v31, 1 }
 0x366   : > { %v1154_v57 = vmax.f32 %v1152_v26, %v1153_v44 }
 0x367   : > { %v1161_v1 = vmax.f32 %v1159_v31, %v1160_v9 }
 0x368   : > { %v1162_v30 = vsub.f32 %v1137_v39, %v1154_v57  ;;  %v1164_v56 = vsub.f32 %v1143_v36, %v1154_v57 }
 0x369   : > { %v1163_v50 = vsub.f32 %v1139_v35, %v1161_v1  ;;  %v1165_v47 = vsub.f32 %v1145_v54, %v1161_v1 }
 0x36a   : > { %v1166_v51 = vmul.f32 1.442695, %v1162_v30  ;;  %v1170_v40 = vmul.f32 1.442695, %v1164_v56 }
 0x36b   : > { %v1168_v34 = vmul.f32 1.442695, %v1163_v50  ;;  %v1172_v0 = vmul.f32 1.442695, %v1165_v47 }
 0x36c   : > { %4512 = vpow2.f32 %v1166_v51 }
 0x36d   : > { %4514 = vpow2.f32 %v1170_v40 }
 0x36e   : > { %4516 = vpow2.f32 %v1168_v34 }
 0x36f   : > { %4518 = vpow2.f32 %v1172_v0 }
 0x376   : > { %v4513_v48 = vpop.eup %4512 }
 0x377   : > { %v4515_v33 = vpop.eup %4514 }
 0x378   : > { %v4517_v58 = vpop.eup %4516  ;;  %v1174_v25 = vadd.f32 %v4515_v33, %v4513_v48 }
 0x379   : > { %v4519_v37 = vpop.eup %4518 }
 0x37a   : > { %v1175_v6 = vrot.slane %v1174_v25, 4  ;;  %v1181_v26 = vadd.f32 %v4519_v37, %v4517_v58 }
 0x37c   : > { %v1176_v31 = vadd.f32 %v1175_v6, %v1174_v25  ;;  %v1182_v9 = vrot.slane %v1181_v26, 4  ;;  %v5282_v25 = vpop.permute.xlu1 %444  ;;  %v537_v6 = vadd.f32 %v5139_v38, %v5255_v18  ;;  %v5295_v38 = vld [vmem:[%s5690_s7] sm:$0xff] }
 0x37e   : > { %v1177_v44 = vrot.slane %v1176_v31, 2  ;;  %v1183_v57 = vadd.f32 %v1182_v9, %v1181_v26  ;;  %v545_v26 = vadd.f32 %v5149_v46, %v5282_v25 }
 0x380   : > { %v1178_v1 = vadd.f32 %v1177_v44, %v1176_v31  ;;  %v1184_v30 = vrot.slane %v1183_v57, 2 }
 0x382   : > { %v1179_v56 = vrot.slane %v1178_v1, 1  ;;  %v1185_v50 = vadd.f32 %v1184_v30, %v1183_v57 }
 0x384   : > { %v1180_v47 = vadd.f32 %v1179_v56, %v1178_v1  ;;  %v1186_v51 = vrot.slane %v1185_v50, 1 }
 0x386   : > { %4520 = vrcp.f32 %v1180_v47  ;;  %v1187_v40 = vadd.f32 %v1186_v51, %v1185_v50  ;;  %v5309_v50 = vld [vmem:[%s5690_s7 + $0x8] sm:$0xff]  ;;  %v5749_v47 = vpack.c.bf16 %v5167_v52, %v5157_v10  ;;  %v5320_v51 = vld [vmem:[%s5691_s8] sm:$0xff]  ;;  %v5333_v52 = vld [vmem:[%s5691_s8 + $0x10] sm:$0xff] }
 0x387   : > { %v5327_v10 = vld [vmem:[%s5691_s8 + $0x8] sm:$0xff] }
 0x388   : > { %4522 = vrcp.f32 %v1187_v40 }
 0x390   : > { %v4521_v34 = vpop.eup %4520 }
 0x391   : > { %v1189_v0 = vmul.f32 %v4521_v34, %v4513_v48  ;;  %v1192_v39 = vmul.f32 %v4521_v34, %v4515_v33  ;;  %v543_v48 = vadd.f32 %v5147_v43, %v5282_v25  ;;  %v5302_v43 = vld [vmem:[%s5689_s6] ss:$0 sm:$0xff] }
 0x392   : > { %v4523_v35 = vpop.eup %4522 }
 0x393   : > { %v1191_v36 = vmul.f32 %v4523_v35, %v4517_v58  ;;  %v1193_v54 = vmul.f32 %v4523_v35, %v4519_v37  ;;  %v4254_v62 = vpack.c.bf16 %v1192_v39, %v1189_v0 }
 0x395   : > { %v4252_v19 = vpack.c.bf16 %v1193_v54, %v1191_v36  ;;  %v5343_v36 = vld [vmem:[%s5691_s8 + $0x18] sm:$0xff] }
 0x397   : > { %4253 = vmatprep.subr.bf16.mxu1 %v4252_v19 }
 0x398   : > { %4255 = vmatpush1.bf16.xpose.msra.mxu1 %v4254_v62 }
 0x39f   : > { %1259 = vmatmul.mubr.f32.vlgmr.msra.gmra.mrb[20].mxu1 %v537_v6 }
 0x3a0   : > { %1263 = vmatprep.mubr.f32.mxu1 %v545_v26 }
 0x3a3   : > { %1264 = vmatmul.mubr.f32.gmra.mrb[22].mxu1 %v543_v48 }
 0x3a4   : > { %4099 = vmatprep.mubr.msk.f32.mxu1 %vm1064_vm1, %v5295_v38 }
 0x472   : > { %v1260_v33 = vpop.f32.mrb[20].mxu1 }
 0x473   : > { %v1262_v58 = vpop.f32.mrb[21].mxu1  ;;  %4092 = vmatprep.mubr.msk.f32.mxu0 %vm1064_vm1, %v1260_v33 }
 0x476   : > { %v1265_v37 = vpop.f32.mrb[22].mxu1 }
 0x477   : > { %v1267_v31 = vpop.f32.mrb[23].mxu1  ;;  %4093 = vmatmul.mubr.msk.f32.vlgmr.msra.gmra.mrb[20].mxu0 %vm1064_vm1, %v1265_v37 }
 0x478   : > { %4106 = vmatprep.mubr.msk.f32.mxu0 %vm1064_vm1, %v5320_v51 }
 0x54a   : > { %v4094_v46 = vpop.f32.mrb[20].mxu0 }
 0x54b   : > { %v1359_v9 = vadd.f32 %v4094_v46, %v5302_v43  ;;  %v1353_v44 = vpop.f32.mrb[21].mxu0 }
 0x54c   : > { %v1354_v57 = vadd.f32 %v5302_v43, %v1353_v44 }
 0x54d   : > { %v1363_v1 = vsub.f32 %v1359_v9, %v1265_v37 }
 0x54e   : > { %v1362_v30 = vsub.f32 %v1354_v57, %v1260_v33  ;;  %v628_v33 = vadd.f32 %v5145_v41, %v5255_v18 }
 0x550   : > { %v4262_v56 = vpack.c.bf16 %v1363_v1, %v1362_v30 }
 0x552   : > { %4263 = vmatprep.subr.bf16.mxu1 %v4262_v56 }
 0x553   : > { %4265 = vmatpush3.bf16.msra.mxu1 %v4262_v56 }
 0x554   : > { %4271 = vmatprep.subr.bf16.mxu1 %v4252_v19 }
 0x556   : > { %4100 = vmatmul.mubr.msk.f32.vlgmr.msra.gmra.mrb[24].mxu1 %vm1064_vm1, %v5309_v50 }
 0x557   : > { %4273 = vmatpush1.bf16.msra.mxu1 %v4254_v62  ;;  %1620 = vmatprep.mubr.f32.mxu1 %v5744_v16  ;;  %v5750_v62 = vpack.c.bf16 %v5165_v32, %v5155_v63 }
 0x558   : > { %4307 = vmatprep.subr.bf16.mxu1 %v5749_v47 }
 0x629   : > { %v4101_v40 = vpop.f32.mrb[24].mxu1 }
 0x62a   : > { %v1446_v34 = vmax.f32 %v4101_v40, 0.0  ;;  %v1436_v0 = vpop.f32.mrb[25].mxu1 }
 0x62b   : > { %v1445_v39 = vmax.f32 %v1436_v0, 0.0 }
 0x62d   : > { %v4266_v35 = vpack.c.bf16 %v1446_v34, %v1445_v39 }
 0x62f   : > { %4267 = vmatprep.subr.bf16.mxu0 %v4266_v35 }
 0x630   : > { %4269 = vmatpush3.bf16.msra.mxu0 %v4266_v35 }
 0x631   : > { %4275 = vmatprep.subr.bf16.mxu0 %v4949_v55 }
 0x633   : > { %4107 = vmatmul.mubr.msk.f32.vlgmr.msra.gmra.mrb[22].mxu0 %vm1064_vm1, %v5327_v10 }
 0x634   : > { %4277 = vmatpush3.bf16.msra.mxu0 %v4987_v4  ;;  %4109 = vmatprep.mubr.msk.f32.mxu0 %vm1064_vm1, %v5333_v52 }
 0x635   : > { %4279 = vmatprep.subr.bf16.mxu0 %v4989_v5 }
 0x637   : > { %4110 = vmatmul.mubr.msk.f32.gmra.mrb[24].mxu0 %vm1064_vm1, %v5343_v36 }
 0x638   : > { %4281 = vmatpush3.bf16.msra.mxu0 %v5010_v12  ;;  %1725 = vmatprep.mubr.f32.mxu0 %v5163_v27 }
 0x639   : > { %4283 = vmatprep.subr.bf16.mxu0 %v5013_v14 }
 0x63c   : > { %4285 = vmatpush3.bf16.msra.mxu0 %v5032_v22 }
 0x63d   : > { %4287 = vmatprep.subr.bf16.mxu0 %v5035_v23 }
 0x640   : > { %4289 = vmatpush3.bf16.msra.mxu0 %v5054_v28 }
 0x641   : > { %4291 = vmatprep.subr.bf16.mxu0 %v5057_v29 }
 0x644   : > { %4293 = vmatpush3.bf16.msra.mxu0 %v5074_v42 }
 0x645   : > { %4295 = vmatprep.subr.bf16.mxu0 %v5083_v45 }
 0x648   : > { %4297 = vmatpush3.bf16.msra.mxu0 %v5091_v49 }
 0x649   : > { %4299 = vmatprep.subr.bf16.mxu0 %v5101_v53 }
 0x64c   : > { %4301 = vmatpush3.bf16.msra.mxu0 %v5109_v59 }
 0x64d   : > { %4303 = vmatprep.subr.bf16.mxu0 %v5119_v11 }
 0x650   : > { %4305 = vmatpush3.bf16.msra.mxu0 %v5127_v24 }
 0x653   : > { %1726 = vmatmul.mubr.f32.vlgmr.msra.gmra.mrb[26].mxu0 %v5160_v17 }
 0x654   : > { %1730 = vmatprep.mubr.f32.mxu0 %v5177_v61 }
 0x657   : > { %1731 = vmatmul.mubr.f32.gmra.mrb[28].mxu0 %v5170_v60 }
 0x658   : > { %4130 = vmatprep.mubr.msk.f32.mxu0 %vm1064_vm1, %v5320_v51 }
 0x706   : > { %v4108_v27 = vpop.f32.mrb[22].mxu0 }
 0x707   : > { %v1525_v54 = vpop.f32.mrb[23].mxu0 }
 0x708   : > { %3821 = vmatmul.mubr.msk.f32.vlgmr.msra.gmra.mrb[26].mxu1 %vm1064_vm1, %v1525_v54 }
 0x709   : > { %4309 = vmatpush1.bf16.msra.mxu1 %v5750_v62  ;;  %1626 = vmatprep.mubr.f32.mxu1 %v5744_v16 }
 0x70a   : > { %v4111_v19 = vpop.f32.mrb[24].mxu0 }
 0x70b   : > { %v1535_v6 = vpop.f32.mrb[25].mxu0 }
 0x70c   : > { %3822 = vmatmul.mubr.msk.f32.gmra.mrb[28].mxu1 %vm1064_vm1, %v4108_v27 }
 0x70d   : > { %1632 = vmatprep.mubr.f32.mxu1 %v5744_v16 }
 0x710   : > { %3823 = vmatmul.mubr.msk.f32.gmra.mrb[30].mxu1 %vm1064_vm1, %v1535_v6 }
 0x711   : > { %1638 = vmatprep.mubr.f32.mxu1 %v5744_v16 }
 0x714   : > { %3824 = vmatmul.mubr.msk.f32.gmra.mrb[32].mxu1 %vm1064_vm1, %v4111_v19 }
 0x715   : > { %1838 = vmatprep.mubr.f32.mxu1 %v5744_v16 }
 0x726   : > { %v3964_v17 = vpop.f32.mrb[26].mxu0 }
 0x727   : > { %v3965_v60 = vpop.f32.mrb[27].mxu0 }
 0x728   : > { %v3966_v63 = vadd.f32 %v3965_v60, %v3964_v17 }
 0x72a   : > { %v3967_v32 = vpop.f32.mrb[28].mxu0  ;;  %1736 = vxpose.xlu0.b32.start [1/2] (short) (narrow) %v3966_v63, 16 }
 0x72b   : > { %v3968_v61 = vpop.f32.mrb[29].mxu0 }
 0x72c   : > { %v3969_v26 = vadd.f32 %v3968_v61, %v3967_v32 }
 0x72e   : > { %1737 = vxpose.xlu0.b32.end [2/2] (short) (narrow) %v3969_v26, 16 }
 0x7aa   : > { %v1752_v48 = vpop.trf.xlu0 }
 0x7ab   : > { %3825 = vmatmul.mubr.msk.f32.vlgmr.msra.gmra.mrb[34].mxu1 %vm1064_vm1, %v1752_v48 }
 0x7ac   : > { %1844 = vmatprep.mubr.f32.mxu1 %v5744_v16 }
 0x7ae   : > { %v1753_v58 = vpop.trf.xlu0 }
 0x7af   : > { %3826 = vmatmul.mubr.msk.f32.gmra.mrb[36].mxu1 %vm1064_vm1, %v1753_v58 }
 0x7b0   : > { %1961 = vmatprep.mubr.f32.mxu1 %v628_v33 }
 0x7db   : > { %v1622_v37 = vpop.f32.mrb[26].mxu1 }
 0x7dc   : > { %v1645_v31 = vadd.f32 %v1622_v37, %v4880_v7  ;;  %v1624_v46 = vpop.f32.mrb[27].mxu1 }
 0x7dd   : > { %v1646_v9 = vadd.f32 %v1624_v46, %v4870_v2 }
 0x7de   : > { %1653 = vst [vmem:[%s5387_s24] sm:$0xff] %v1645_v31 }
 0x7df   : > { %1654 = vst [vmem:[%s5387_s24 + $0x8] sm:$0xff] %v1646_v9  ;;  %v1628_v41 = vpop.f32.mrb[28].mxu1 }
 0x7e0   : > { %v1647_v44 = vadd.f32 %v1628_v41, %v4883_v8  ;;  %v1630_v7 = vpop.f32.mrb[29].mxu1 }
 0x7e1   : > { %v1648_v57 = vadd.f32 %v1630_v7, %v4873_v3 }
 0x7e2   : > { %1655 = vst [vmem:[%s5387_s24 + $0x40] sm:$0xff] %v1647_v44 }
 0x7e3   : > { %1656 = vst [vmem:[%s5387_s24 + $0x48] sm:$0xff] %v1648_v57  ;;  %v1634_v2 = vpop.f32.mrb[30].mxu1 }
 0x7e4   : > { %v1649_v1 = vadd.f32 %v1634_v2, %v4900_v20  ;;  %v1636_v30 = vpop.f32.mrb[31].mxu1 }
 0x7e5   : > { %v1650_v56 = vadd.f32 %v1636_v30, %v4890_v13 }
 0x7e6   : > { %1657 = vst [vmem:[%s5387_s24 + $0x80] sm:$0xff] %v1649_v1 }
 0x7e7   : > { %1658 = vst [vmem:[%s5387_s24 + $0x88] sm:$0xff] %v1650_v56  ;;  %v1640_v47 = vpop.f32.mrb[32].mxu1 }
 0x7e8   : > { %v1651_v40 = vadd.f32 %v1640_v47, %v4903_v21  ;;  %v1642_v34 = vpop.f32.mrb[33].mxu1 }
 0x7e9   : > { %v1652_v8 = vadd.f32 %v1642_v34, %v4893_v15 }
 0x7ea   : > { %1659 = vst [vmem:[%s5387_s24 + $0xc0] sm:$0xff] %v1651_v40 }
 0x7eb   : > { %1660 = vst [vmem:[%s5387_s24 + $0xc8] sm:$0xff] %v1652_v8 }
 0x87e   : > { %v1840_v0 = vpop.f32.mrb[34].mxu1 }
 0x87f   : > { %v1842_v3 = vpop.f32.mrb[35].mxu1 }
 0x882   : > { %v1846_v39 = vpop.f32.mrb[36].mxu1 }
 0x883   : > { %v1851_v35 = vmax.f32 %v1840_v0, %v1846_v39  ;;  %v1848_v27 = vpop.f32.mrb[37].mxu1 }
 0x884   : > { %v1858_v54 = vmax.f32 %v1842_v3, %v1848_v27 }
 0x885   : > { %v1852_v20 = vrot.slane %v1851_v35, 4 }
 0x886   : > { %v1859_v62 = vrot.slane %v1858_v54, 4 }
 0x887   : > { %v1853_v19 = vmax.f32 %v1851_v35, %v1852_v20 }
 0x888   : > { %v1860_v13 = vmax.f32 %v1858_v54, %v1859_v62 }
 0x889   : > { %v1854_v6 = vrot.slane %v1853_v19, 2 }
 0x88a   : > { %v1861_v17 = vrot.slane %v1860_v13, 2 }
 0x88b   : > { %v1855_v60 = vmax.f32 %v1853_v19, %v1854_v6 }
 0x88c   : > { %v1862_v63 = vmax.f32 %v1860_v13, %v1861_v17 }
 0x88d   : > { %v1856_v21 = vrot.slane %v1855_v60, 1 }
 0x88e   : > { %v1863_v32 = vrot.slane %v1862_v63, 1 }
 0x88f   : > { %v1857_v61 = vmax.f32 %v1855_v60, %v1856_v21  ;;  %v5752_v21 = vld [vmem:[#allocation36_spill] sm:$0xff] }
 0x890   : > { %v1864_v15 = vmax.f32 %v1862_v63, %v1863_v32 }
 0x891   : > { %v1865_v26 = vsub.f32 %v1840_v0, %v1857_v61  ;;  %v1867_v48 = vsub.f32 %v1846_v39, %v1857_v61  ;;  %v5754_v61 = vld [vmem:[#allocation8_spill] sm:$0xff] }
 0x892   : > { %v1866_v33 = vsub.f32 %v1842_v3, %v1864_v15  ;;  %v1868_v58 = vsub.f32 %v1848_v27, %v1864_v15  ;;  %v626_v15 = vadd.f32 %v5754_v61, %v5255_v18 }
 0x893   : > { %v1869_v37 = vmul.f32 1.442695, %v1865_v26  ;;  %v1873_v31 = vmul.f32 1.442695, %v1867_v48  ;;  %v5755_v26 = vld [vmem:[#allocation10_spill] sm:$0xff] }
 0x894   : > { %v1871_v46 = vmul.f32 1.442695, %v1866_v33  ;;  %v1875_v9 = vmul.f32 1.442695, %v1868_v58  ;;  %v634_v48 = vadd.f32 %v5755_v26, %v5282_v25  ;;  %v5756_v33 = vld [vmem:[#allocation9_spill] sm:$0xff] }
 0x895   : > { %4524 = vpow2.f32 %v1869_v37  ;;  %v632_v58 = vadd.f32 %v5756_v33, %v5282_v25 }
 0x896   : > { %4526 = vpow2.f32 %v1873_v31 }
 0x897   : > { %4528 = vpow2.f32 %v1871_v46 }
 0x898   : > { %4530 = vpow2.f32 %v1875_v9 }
 0x89f   : > { %v4525_v41 = vpop.eup %4524 }
 0x8a0   : > { %v4527_v44 = vpop.eup %4526 }
 0x8a1   : > { %v4529_v7 = vpop.eup %4528  ;;  %v1877_v57 = vadd.f32 %v4527_v44, %v4525_v41 }
 0x8a2   : > { %v4531_v2 = vpop.eup %4530 }
 0x8a3   : > { %v1878_v1 = vrot.slane %v1877_v57, 4  ;;  %v1884_v30 = vadd.f32 %v4531_v2, %v4529_v7 }
 0x8a5   : > { %v1879_v56 = vadd.f32 %v1878_v1, %v1877_v57  ;;  %v1885_v47 = vrot.slane %v1884_v30, 4 }
 0x8a7   : > { %v1880_v40 = vrot.slane %v1879_v56, 2  ;;  %v1886_v34 = vadd.f32 %v1885_v47, %v1884_v30  ;;  %v5758_v47 = vld [vmem:[#allocation21_spill] sm:$0xff] }
 0x8a9   : > { %v1881_v8 = vadd.f32 %v1880_v40, %v1879_v56  ;;  %v1887_v0 = vrot.slane %v1886_v34, 2  ;;  %v5757_v56 = vld [vmem:[#allocation29_spill] sm:$0xff] }
 0x8aa   : > { %v5759_v40 = vpack.c.bf16 %v5757_v56, %v5758_v47  ;;  %v4562_v56 = vld [vmem:[%s4860_s27 + $0x50] sm:$0xff] }
 0x8ab   : > { %v1882_v3 = vrot.slane %v1881_v8, 1  ;;  %v1888_v39 = vadd.f32 %v1887_v0, %v1886_v34 }
 0x8ad   : > { %v1883_v35 = vadd.f32 %v1882_v3, %v1881_v8  ;;  %v1889_v27 = vrot.slane %v1888_v39, 1 }
 0x8af   : > { %4532 = vrcp.f32 %v1883_v35  ;;  %v1890_v54 = vadd.f32 %v1889_v27, %v1888_v39  ;;  %v5760_v35 = vld [vmem:[#allocation25_spill] sm:$0xff]  ;;  %v5761_v27 = vld [vmem:[#allocation22_spill] sm:$0xff] }
 0x8b1   : > { %4534 = vrcp.f32 %v1890_v54  ;;  %v5762_v54 = vld [vmem:[#allocation33_spill] sm:$0xff] }
 0x8b9   : > { %v4533_v20 = vpop.eup %4532 }
 0x8ba   : > { %v1892_v62 = vmul.f32 %v4533_v20, %v4525_v41  ;;  %v1895_v19 = vmul.f32 %v4533_v20, %v4527_v44  ;;  %v5763_v20 = vld [vmem:[#allocation30_spill] sm:$0xff] }
 0x8bb   : > { %v4535_v13 = vpop.eup %4534 }
 0x8bc   : > { %v1894_v6 = vmul.f32 %v4535_v13, %v4529_v7  ;;  %v1896_v17 = vmul.f32 %v4535_v13, %v4531_v2  ;;  %v4312_v60 = vpack.c.bf16 %v1895_v19, %v1892_v62  ;;  %v5764_v13 = vld [vmem:[#allocation27_spill] sm:$0xff] }
 0x8be   : > { %v4310_v63 = vpack.c.bf16 %v1896_v17, %v1894_v6  ;;  %v5765_v6 = vld [vmem:[#allocation19_spill] sm:$0xff] }
 0x8bf   : > { %v5766_v17 = vpack.c.bf16 %v5764_v13, %v5765_v6  ;;  %v4567_v6 = vld [vmem:[%s4860_s27 + $0xd8] sm:$0xff] }
 0x8c0   : > { %4311 = vmatprep.subr.bf16.mxu1 %v4310_v63 }
 0x8c1   : > { %4313 = vmatpush1.bf16.xpose.msra.mxu1 %v4312_v60 }
 0x8c2   : > { %4316 = vmatprep.subr.msk.bf16.mxu1 %vm5270_vm2, %v5752_v21 }
 0x8c8   : > { %1962 = vmatmul.mubr.f32.vlgmr.msra.gmra.mrb[38].mxu1 %v626_v15 }
 0x8c9   : > { %1966 = vmatprep.mubr.f32.mxu1 %v634_v48  ;;  %4319 = vmatpush3.bf16.xpose.msk.msra.mxu1 %vm5270_vm2, %v5752_v21 }
 0x8cc   : > { %1967 = vmatmul.mubr.f32.gmra.mrb[40].mxu1 %v632_v58 }
 0x99b   : > { %v1963_v37 = vpop.f32.mrb[38].mxu1 }
 0x99c   : > { %v1965_v31 = vpop.f32.mrb[39].mxu1  ;;  %4116 = vmatprep.mubr.msk.f32.mxu1 %vm1064_vm1, %v1963_v37 }
 0x99d   : > { %v5767_v31 = vld [vmem:[#allocation13_spill] sm:$0xff] }
 0x99f   : > { %v1968_v46 = vpop.f32.mrb[40].mxu1 }
 0x9a0   : > { %v1970_v9 = vpop.f32.mrb[41].mxu1  ;;  %4117 = vmatmul.mubr.msk.f32.vlgmr.msra.gmra.mrb[42].mxu1 %vm1064_vm1, %v1968_v46 }
 0x9a1   : > { %4123 = vmatprep.mubr.msk.f32.mxu1 %vm1064_vm1, %v5295_v38 }
 0xa73   : > { %v4118_v41 = vpop.f32.mrb[42].mxu1 }
 0xa74   : > { %v2050_v44 = vadd.f32 %v4118_v41, %v5302_v43  ;;  %v2044_v7 = vpop.f32.mrb[43].mxu1 }
 0xa75   : > { %v2045_v57 = vadd.f32 %v5302_v43, %v2044_v7 }
 0xa76   : > { %v2054_v2 = vsub.f32 %v2050_v44, %v1968_v46  ;;  %v717_v46 = vadd.f32 %v5767_v31, %v5255_v18  ;;  %v4560_v44 = vld [vmem:[%s4860_s27 + $0x10] sm:$0xff] }
 0xa77   : > { %v2053_v1 = vsub.f32 %v2045_v57, %v1963_v37 }
 0xa79   : > { %v4320_v30 = vpack.c.bf16 %v2054_v2, %v2053_v1  ;;  %v4561_v2 = vld [vmem:[%s4860_s27 + $0x18] sm:$0xff] }
 0xa7b   : > { %4321 = vmatprep.subr.bf16.mxu1 %v4320_v30 }
 0xa7c   : > { %4323 = vmatpush3.bf16.msra.mxu1 %v4320_v30 }
 0xa7d   : > { %4329 = vmatprep.subr.bf16.mxu1 %v4310_v63 }
 0xa7f   : > { %4124 = vmatmul.mubr.msk.f32.vlgmr.msra.gmra.mrb[44].mxu1 %vm1064_vm1, %v5309_v50 }
 0xa80   : > { %4331 = vmatpush1.bf16.msra.mxu1 %v4312_v60  ;;  %2293 = vmatprep.mubr.f32.mxu1 %v5744_v16 }
 0xa81   : > { %4365 = vmatprep.subr.bf16.mxu1 %v5759_v40 }
 0xb52   : > { %v4125_v34 = vpop.f32.mrb[44].mxu1 }
 0xb53   : > { %v2131_v8 = vmax.f32 %v4125_v34, 0.0  ;;  %v2121_v0 = vpop.f32.mrb[45].mxu1  ;;  %v4563_v34 = vld [vmem:[%s4860_s27 + $0x58] sm:$0xff] }
 0xb54   : > { %v2130_v3 = vmax.f32 %v2121_v0, 0.0 }
 0xb56   : > { %v4324_v39 = vpack.c.bf16 %v2131_v8, %v2130_v3  ;;  %v4564_v3 = vld [vmem:[%s4860_s27 + $0x90] sm:$0xff] }
 0xb58   : > { %4325 = vmatprep.subr.bf16.mxu0 %v4324_v39 }
 0xb59   : > { %4327 = vmatpush3.bf16.msra.mxu0 %v4324_v39 }
 0xb5a   : > { %4333 = vmatprep.subr.bf16.mxu0 %v4949_v55 }
 0xb5c   : > { %4131 = vmatmul.mubr.msk.f32.vlgmr.msra.gmra.mrb[30].mxu0 %vm1064_vm1, %v5327_v10 }
 0xb5d   : > { %4335 = vmatpush3.bf16.msra.mxu0 %v4987_v4  ;;  %4133 = vmatprep.mubr.msk.f32.mxu0 %vm1064_vm1, %v5333_v52 }
 0xb5e   : > { %4337 = vmatprep.subr.bf16.mxu0 %v4989_v5 }
 0xb60   : > { %4134 = vmatmul.mubr.msk.f32.gmra.mrb[32].mxu0 %vm1064_vm1, %v5343_v36 }
 0xb61   : > { %4339 = vmatpush3.bf16.msra.mxu0 %v5010_v12  ;;  %2398 = vmatprep.mubr.f32.mxu0 %v5760_v35 }
 0xb62   : > { %4341 = vmatprep.subr.bf16.mxu0 %v5013_v14 }
 0xb65   : > { %4343 = vmatpush3.bf16.msra.mxu0 %v5032_v22 }
 0xb66   : > { %4345 = vmatprep.subr.bf16.mxu0 %v5035_v23 }
 0xb69   : > { %4347 = vmatpush3.bf16.msra.mxu0 %v5054_v28 }
 0xb6a   : > { %4349 = vmatprep.subr.bf16.mxu0 %v5057_v29 }
 0xb6d   : > { %4351 = vmatpush3.bf16.msra.mxu0 %v5074_v42 }
 0xb6e   : > { %4353 = vmatprep.subr.bf16.mxu0 %v5083_v45 }
 0xb71   : > { %4355 = vmatpush3.bf16.msra.mxu0 %v5091_v49 }
 0xb72   : > { %4357 = vmatprep.subr.bf16.mxu0 %v5101_v53 }
 0xb75   : > { %4359 = vmatpush3.bf16.msra.mxu0 %v5109_v59 }
 0xb76   : > { %4361 = vmatprep.subr.bf16.mxu0 %v5119_v11 }
 0xb79   : > { %4363 = vmatpush3.bf16.msra.mxu0 %v5127_v24 }
 0xb7c   : > { %2399 = vmatmul.mubr.f32.vlgmr.msra.gmra.mrb[34].mxu0 %v5761_v27  ;;  %v4565_v27 = vld [vmem:[%s4860_s27 + $0x98] sm:$0xff] }
 0xb7d   : > { %2403 = vmatprep.mubr.f32.mxu0 %v5762_v54 }
 0xb80   : > { %2404 = vmatmul.mubr.f32.gmra.mrb[36].mxu0 %v5763_v20 }
 0xb81   : > { %4154 = vmatprep.mubr.msk.f32.mxu0 %vm1064_vm1, %v5320_v51 }
 0xc2f   : > { %v4132_v62 = vpop.f32.mrb[30].mxu0 }
 0xc30   : > { %v2198_v19 = vpop.f32.mrb[31].mxu0 }
 0xc31   : > { %3837 = vmatmul.mubr.msk.f32.vlgmr.msra.gmra.mrb[46].mxu1 %vm1064_vm1, %v2198_v19 }
 0xc32   : > { %4367 = vmatpush1.bf16.msra.mxu1 %v5766_v17  ;;  %2299 = vmatprep.mubr.f32.mxu1 %v5744_v16 }
 0xc33   : > { %v4135_v60 = vpop.f32.mrb[32].mxu0 }
 0xc34   : > { %v2208_v63 = vpop.f32.mrb[33].mxu0 }
 0xc35   : > { %3838 = vmatmul.mubr.msk.f32.gmra.mrb[48].mxu1 %vm1064_vm1, %v4132_v62  ;;  %v4566_v62 = vld [vmem:[%s4860_s27 + $0xd0] sm:$0xff] }
 0xc36   : > { %2305 = vmatprep.mubr.f32.mxu1 %v5744_v16 }
 0xc39   : > { %3839 = vmatmul.mubr.msk.f32.gmra.mrb[50].mxu1 %vm1064_vm1, %v2208_v63 }
 0xc3a   : > { %2311 = vmatprep.mubr.f32.mxu1 %v5744_v16 }
 0xc3d   : > { %3840 = vmatmul.mubr.msk.f32.gmra.mrb[52].mxu1 %vm1064_vm1, %v4135_v60 }
 0xc3e   : > { %2511 = vmatprep.mubr.f32.mxu1 %v5744_v16 }
 0xc4f   : > { %v4016_v61 = vpop.f32.mrb[34].mxu0 }
 0xc50   : > { %v4017_v15 = vpop.f32.mrb[35].mxu0 }
 0xc51   : > { %v4018_v26 = vadd.f32 %v4017_v15, %v4016_v61 }
 0xc53   : > { %v4019_v48 = vpop.f32.mrb[36].mxu0  ;;  %2409 = vxpose.xlu1.b32.start [1/2] (short) (narrow) %v4018_v26, 16 }
 0xc54   : > { %v4020_v33 = vpop.f32.mrb[37].mxu0 }
 0xc55   : > { %v4021_v58 = vadd.f32 %v4020_v33, %v4019_v48 }
 0xc57   : > { %2410 = vxpose.xlu1.b32.end [2/2] (short) (narrow) %v4021_v58, 16 }
 0xcd3   : > { %v2425_v37 = vpop.trf.xlu1 }
 0xcd4   : > { %3841 = vmatmul.mubr.msk.f32.vlgmr.msra.gmra.mrb[54].mxu1 %vm1064_vm1, %v2425_v37 }
 0xcd5   : > { %2517 = vmatprep.mubr.f32.mxu1 %v5744_v16 }
 0xcd7   : > { %v2426_v9 = vpop.trf.xlu1 }
 0xcd8   : > { %3842 = vmatmul.mubr.msk.f32.gmra.mrb[56].mxu1 %vm1064_vm1, %v2426_v9 }
 0xcd9   : > { %2634 = vmatprep.mubr.f32.mxu1 %v717_v46 }
 0xd04   : > { %v2295_v41 = vpop.f32.mrb[46].mxu1 }
 0xd05   : > { %v2318_v7 = vadd.f32 %v4560_v44, %v2295_v41  ;;  %v2297_v57 = vpop.f32.mrb[47].mxu1 }
 0xd06   : > { %v2319_v1 = vadd.f32 %v4561_v2, %v2297_v57 }
 0xd07   : > { %2326 = vst [vmem:[%s5387_s24 + $0x10] sm:$0xff] %v2318_v7 }
 0xd08   : > { %2327 = vst [vmem:[%s5387_s24 + $0x18] sm:$0xff] %v2319_v1  ;;  %v2301_v30 = vpop.f32.mrb[48].mxu1 }
 0xd09   : > { %v2320_v47 = vadd.f32 %v4562_v56, %v2301_v30  ;;  %v2303_v40 = vpop.f32.mrb[49].mxu1 }
 0xd0a   : > { %v2321_v8 = vadd.f32 %v4563_v34, %v2303_v40 }
 0xd0b   : > { %2328 = vst [vmem:[%s5387_s24 + $0x50] sm:$0xff] %v2320_v47 }
 0xd0c   : > { %2329 = vst [vmem:[%s5387_s24 + $0x58] sm:$0xff] %v2321_v8  ;;  %v2307_v0 = vpop.f32.mrb[50].mxu1 }
 0xd0d   : > { %v2322_v39 = vadd.f32 %v4564_v3, %v2307_v0  ;;  %v2309_v35 = vpop.f32.mrb[51].mxu1 }
 0xd0e   : > { %v2323_v54 = vadd.f32 %v4565_v27, %v2309_v35 }
 0xd0f   : > { %2330 = vst [vmem:[%s5387_s24 + $0x90] sm:$0xff] %v2322_v39 }
 0xd10   : > { %2331 = vst [vmem:[%s5387_s24 + $0x98] sm:$0xff] %v2323_v54  ;;  %v2313_v20 = vpop.f32.mrb[52].mxu1 }
 0xd11   : > { %v2324_v19 = vadd.f32 %v4566_v62, %v2313_v20  ;;  %v2315_v13 = vpop.f32.mrb[53].mxu1 }
 0xd12   : > { %v2325_v17 = vadd.f32 %v4567_v6, %v2315_v13 }
 0xd13   : > { %2332 = vst [vmem:[%s5387_s24 + $0xd0] sm:$0xff] %v2324_v19 }
 0xd14   : > { %2333 = vst [vmem:[%s5387_s24 + $0xd8] sm:$0xff] %v2325_v17 }
 0xda7   : > { %v2513_v60 = vpop.f32.mrb[54].mxu1 }
 0xda8   : > { %v2515_v63 = vpop.f32.mrb[55].mxu1 }
 0xdab   : > { %v2519_v61 = vpop.f32.mrb[56].mxu1 }
 0xdac   : > { %v2524_v15 = vmax.f32 %v2513_v60, %v2519_v61  ;;  %v2521_v26 = vpop.f32.mrb[57].mxu1 }
 0xdad   : > { %v2531_v48 = vmax.f32 %v2515_v63, %v2521_v26 }
 0xdae   : > { %v2525_v33 = vrot.slane %v2524_v15, 4 }
 0xdaf   : > { %v2532_v58 = vrot.slane %v2531_v48, 4 }
 0xdb0   : > { %v2526_v37 = vmax.f32 %v2524_v15, %v2525_v33 }
 0xdb1   : > { %v2533_v31 = vmax.f32 %v2531_v48, %v2532_v58 }
 0xdb2   : > { %v2527_v46 = vrot.slane %v2526_v37, 2 }
 0xdb3   : > { %v2534_v9 = vrot.slane %v2533_v31, 2 }
 0xdb4   : > { %v2528_v41 = vmax.f32 %v2526_v37, %v2527_v46 }
 0xdb5   : > { %v2535_v44 = vmax.f32 %v2533_v31, %v2534_v9 }
 0xdb6   : > { %v2529_v7 = vrot.slane %v2528_v41, 1 }
 0xdb7   : > { %v2536_v57 = vrot.slane %v2535_v44, 1 }
 0xdb8   : > { %v2530_v2 = vmax.f32 %v2528_v41, %v2529_v7 }
 0xdb9   : > { %v2537_v1 = vmax.f32 %v2535_v44, %v2536_v57 }
 0xdba   : > { %v2538_v30 = vsub.f32 %v2513_v60, %v2530_v2  ;;  %v2540_v56 = vsub.f32 %v2519_v61, %v2530_v2  ;;  %v5768_v2 = vld [vmem:[#allocation11_spill] sm:$0xff] }
 0xdbb   : > { %v2539_v47 = vsub.f32 %v2515_v63, %v2537_v1  ;;  %v2541_v40 = vsub.f32 %v2521_v26, %v2537_v1  ;;  %v715_v1 = vadd.f32 %v5768_v2, %v5255_v18  ;;  %v4572_v2 = vld [vmem:[%s4860_s27 + $0xa0] sm:$0xff] }
 0xdbc   : > { %v2542_v34 = vmul.f32 1.442695, %v2538_v30  ;;  %v2546_v8 = vmul.f32 1.442695, %v2540_v56  ;;  %v5769_v30 = vld [vmem:[#allocation17_spill] sm:$0xff] }
 0xdbd   : > { %v2544_v0 = vmul.f32 1.442695, %v2539_v47  ;;  %v2548_v3 = vmul.f32 1.442695, %v2541_v40  ;;  %v723_v56 = vadd.f32 %v5769_v30, %v5282_v25  ;;  %v5770_v47 = vld [vmem:[#allocation15_spill] sm:$0xff] }
 0xdbe   : > { %4536 = vpow2.f32 %v2542_v34  ;;  %v721_v40 = vadd.f32 %v5770_v47, %v5282_v25 }
 0xdbf   : > { %4538 = vpow2.f32 %v2546_v8 }
 0xdc0   : > { %4540 = vpow2.f32 %v2544_v0 }
 0xdc1   : > { %4542 = vpow2.f32 %v2548_v3 }
 0xdc8   : > { %v4537_v39 = vpop.eup %4536 }
 0xdc9   : > { %v4539_v35 = vpop.eup %4538 }
 0xdca   : > { %v4541_v27 = vpop.eup %4540  ;;  %v2550_v54 = vadd.f32 %v4539_v35, %v4537_v39 }
 0xdcb   : > { %v4543_v20 = vpop.eup %4542 }
 0xdcc   : > { %v2551_v62 = vrot.slane %v2550_v54, 4  ;;  %v2557_v19 = vadd.f32 %v4543_v20, %v4541_v27 }
 0xdce   : > { %v2552_v13 = vadd.f32 %v2551_v62, %v2550_v54  ;;  %v2558_v6 = vrot.slane %v2557_v19, 4 }
 0xdd0   : > { %v2553_v17 = vrot.slane %v2552_v13, 2  ;;  %v2559_v60 = vadd.f32 %v2558_v6, %v2557_v19 }
 0xdd2   : > { %v2554_v63 = vadd.f32 %v2553_v17, %v2552_v13  ;;  %v2560_v61 = vrot.slane %v2559_v60, 2  ;;  %v5771_v13 = vld [vmem:[#allocation31_spill] sm:$0xff] }
 0xdd4   : > { %v2555_v15 = vrot.slane %v2554_v63, 1  ;;  %v2561_v26 = vadd.f32 %v2560_v61, %v2559_v60 }
 0xdd6   : > { %v2556_v48 = vadd.f32 %v2555_v15, %v2554_v63  ;;  %v2562_v33 = vrot.slane %v2561_v26, 1 }
 0xdd8   : > { %4544 = vrcp.f32 %v2556_v48  ;;  %v2563_v58 = vadd.f32 %v2562_v33, %v2561_v26  ;;  %v4568_v26 = vld [vmem:[%s4860_s27 + $0x20] sm:$0xff] }
 0xdda   : > { %4546 = vrcp.f32 %v2563_v58  ;;  %v4569_v58 = vld [vmem:[%s4860_s27 + $0x28] sm:$0xff] }
 0xde2   : > { %v4545_v37 = vpop.eup %4544 }
 0xde3   : > { %v2565_v31 = vmul.f32 %v4545_v37, %v4537_v39  ;;  %v2568_v46 = vmul.f32 %v4545_v37, %v4539_v35 }
 0xde4   : > { %v4547_v9 = vpop.eup %4546 }
 0xde5   : > { %v2567_v41 = vmul.f32 %v4547_v9, %v4541_v27  ;;  %v2569_v44 = vmul.f32 %v4547_v9, %v4543_v20  ;;  %v4370_v7 = vpack.c.bf16 %v2568_v46, %v2565_v31  ;;  %v4570_v46 = vld [vmem:[%s4860_s27 + $0x60] sm:$0xff] }
 0xde7   : > { %v4368_v57 = vpack.c.bf16 %v2569_v44, %v2567_v41  ;;  %v4571_v44 = vld [vmem:[%s4860_s27 + $0x68] sm:$0xff] }
 0xde9   : > { %4369 = vmatprep.subr.bf16.mxu1 %v4368_v57 }
 0xdea   : > { %4371 = vmatpush1.bf16.xpose.msra.mxu1 %v4370_v7 }
 0xdeb   : > { %4374 = vmatprep.subr.msk.bf16.mxu1 %vm5270_vm2, %v5752_v21 }
 0xdf1   : > { %2635 = vmatmul.mubr.f32.vlgmr.msra.gmra.mrb[58].mxu1 %v715_v1 }
 0xdf2   : > { %2639 = vmatprep.mubr.f32.mxu1 %v723_v56  ;;  %4377 = vmatpush3.bf16.xpose.msk.msra.mxu1 %vm5270_vm2, %v5752_v21  ;;  %v4573_v56 = vld [vmem:[%s4860_s27 + $0xa8] sm:$0xff] }
 0xdf5   : > { %2640 = vmatmul.mubr.f32.gmra.mrb[60].mxu1 %v721_v40 }
 0xec4   : > { %v2636_v34 = vpop.f32.mrb[58].mxu1 }
 0xec5   : > { %v2638_v8 = vpop.f32.mrb[59].mxu1  ;;  %4140 = vmatprep.mubr.msk.f32.mxu1 %vm1064_vm1, %v2636_v34 }
 0xec8   : > { %v2641_v0 = vpop.f32.mrb[60].mxu1 }
 0xec9   : > { %v2643_v3 = vpop.f32.mrb[61].mxu1  ;;  %4141 = vmatmul.mubr.msk.f32.vlgmr.msra.gmra.mrb[62].mxu1 %vm1064_vm1, %v2641_v0 }
 0xeca   : > { %4147 = vmatprep.mubr.msk.f32.mxu1 %vm1064_vm1, %v5295_v38  ;;  %v5772_v38 = vld [vmem:[#allocation23_spill] sm:$0xff]  ;;  %v4575_v3 = vld [vmem:[%s4860_s27 + $0xe8] sm:$0xff] }
 0xecb   : > { %v5773_v6 = vpack.c.bf16 %v5771_v13, %v5772_v38 }
 0xf9c   : > { %v4142_v39 = vpop.f32.mrb[62].mxu1 }
 0xf9d   : > { %v2723_v35 = vadd.f32 %v4142_v39, %v5302_v43  ;;  %v2717_v27 = vpop.f32.mrb[63].mxu1 }
 0xf9e   : > { %v2718_v54 = vadd.f32 %v5302_v43, %v2717_v27 }
 0xf9f   : > { %v2727_v20 = vsub.f32 %v2723_v35, %v2641_v0 }
 0xfa0   : > { %v2726_v62 = vsub.f32 %v2718_v54, %v2636_v34  ;;  %v4574_v34 = vld [vmem:[%s4860_s27 + $0xe0] sm:$0xff] }
 0xfa2   : > { %v4378_v19 = vpack.c.bf16 %v2727_v20, %v2726_v62 }
 0xfa4   : > { %4379 = vmatprep.subr.bf16.mxu1 %v4378_v19 }
 0xfa5   : > { %4381 = vmatpush3.bf16.msra.mxu1 %v4378_v19 }
 0xfa6   : > { %4387 = vmatprep.subr.bf16.mxu1 %v4368_v57 }
 0xfa8   : > { %4148 = vmatmul.mubr.msk.f32.vlgmr.msra.gmra.mrb[64].mxu1 %vm1064_vm1, %v5309_v50  ;;  %v5774_v50 = vld [vmem:[#allocation26_spill] sm:$0xff] }
 0xfa9   : > { %4389 = vmatpush1.bf16.msra.mxu1 %v4370_v7  ;;  %2966 = vmatprep.mubr.f32.mxu1 %v5744_v16 }
 0xfaa   : > { %4423 = vmatprep.subr.bf16.mxu1 %v5773_v6 }
0x107b   : > { %v4149_v17 = vpop.f32.mrb[64].mxu1 }
0x107c   : > { %v2804_v60 = vmax.f32 %v4149_v17, 0.0  ;;  %v2794_v63 = vpop.f32.mrb[65].mxu1 }
0x107d   : > { %v2803_v43 = vmax.f32 %v2794_v63, 0.0 }
0x107f   : > { %v4382_v61 = vpack.c.bf16 %v2804_v60, %v2803_v43 }
0x1081   : > { %4383 = vmatprep.subr.bf16.mxu0 %v4382_v61 }
0x1082   : > { %4385 = vmatpush3.bf16.msra.mxu0 %v4382_v61 }
0x1083   : > { %4391 = vmatprep.subr.bf16.mxu0 %v4949_v55  ;;  %v5775_v55 = vld [vmem:[#allocation24_spill] sm:$0xff] }
0x1085   : > { %4155 = vmatmul.mubr.msk.f32.vlgmr.msra.gmra.mrb[38].mxu0 %vm1064_vm1, %v5327_v10  ;;  %v5781_v10 = vld [vmem:[#allocation14_spill] sm:$0xff] }
0x1086   : > { %4393 = vmatpush3.bf16.msra.mxu0 %v4987_v4  ;;  %4157 = vmatprep.mubr.msk.f32.mxu0 %vm1064_vm1, %v5333_v52  ;;  %v5776_v4 = vld [vmem:[#allocation34_spill] sm:$0xff]  ;;  %v806_v52 = vadd.f32 %v5781_v10, %v5255_v18 }
0x1087   : > { %4395 = vmatprep.subr.bf16.mxu0 %v4989_v5  ;;  %v5777_v5 = vld [vmem:[#allocation32_spill] sm:$0xff] }
0x1089   : > { %4158 = vmatmul.mubr.msk.f32.gmra.mrb[40].mxu0 %vm1064_vm1, %v5343_v36 }
0x108a   : > { %4397 = vmatpush3.bf16.msra.mxu0 %v5010_v12  ;;  %3071 = vmatprep.mubr.f32.mxu0 %v5774_v50 }
0x108b   : > { %4399 = vmatprep.subr.bf16.mxu0 %v5013_v14 }
0x108e   : > { %4401 = vmatpush3.bf16.msra.mxu0 %v5032_v22  ;;  %v5778_v22 = vld [vmem:[#allocation28_spill] sm:$0xff] }
0x108f   : > { %4403 = vmatprep.subr.bf16.mxu0 %v5035_v23  ;;  %v5779_v23 = vld [vmem:[#allocation20_spill] sm:$0xff] }
0x1092   : > { %4405 = vmatpush3.bf16.msra.mxu0 %v5054_v28  ;;  %v5780_v28 = vpack.c.bf16 %v5778_v22, %v5779_v23 }
0x1093   : > { %4407 = vmatprep.subr.bf16.mxu0 %v5057_v29 }
0x1096   : > { %4409 = vmatpush3.bf16.msra.mxu0 %v5074_v42 }
0x1097   : > { %4411 = vmatprep.subr.bf16.mxu0 %v5083_v45 }
0x109a   : > { %4413 = vmatpush3.bf16.msra.mxu0 %v5091_v49 }
0x109b   : > { %4415 = vmatprep.subr.bf16.mxu0 %v5101_v53 }
0x109e   : > { %4417 = vmatpush3.bf16.msra.mxu0 %v5109_v59 }
0x109f   : > { %4419 = vmatprep.subr.bf16.mxu0 %v5119_v11 }
0x10a2   : > { %4421 = vmatpush3.bf16.msra.mxu0 %v5127_v24 }
0x10a5   : > { %3072 = vmatmul.mubr.f32.vlgmr.msra.gmra.mrb[42].mxu0 %v5775_v55 }
0x10a6   : > { %3076 = vmatprep.mubr.f32.mxu0 %v5776_v4 }
0x10a9   : > { %3077 = vmatmul.mubr.f32.gmra.mrb[44].mxu0 %v5777_v5 }
0x10aa   : > { %4178 = vmatprep.mubr.msk.f32.mxu0 %vm1064_vm1, %v5320_v51 }
0x1158   : > { %v4156_v12 = vpop.f32.mrb[38].mxu0 }
0x1159   : > { %v2871_v14 = vpop.f32.mrb[39].mxu0 }
0x115a   : > { %3853 = vmatmul.mubr.msk.f32.vlgmr.msra.gmra.mrb[66].mxu1 %vm1064_vm1, %v2871_v14 }
0x115b   : > { %4425 = vmatpush1.bf16.msra.mxu1 %v5780_v28  ;;  %2972 = vmatprep.mubr.f32.mxu1 %v5744_v16 }
0x115c   : > { %v4159_v29 = vpop.f32.mrb[40].mxu0 }
0x115d   : > { %v2881_v42 = vpop.f32.mrb[41].mxu0 }
0x115e   : > { %3854 = vmatmul.mubr.msk.f32.gmra.mrb[68].mxu1 %vm1064_vm1, %v4156_v12 }
0x115f   : > { %2978 = vmatprep.mubr.f32.mxu1 %v5744_v16 }
0x1162   : > { %3855 = vmatmul.mubr.msk.f32.gmra.mrb[70].mxu1 %vm1064_vm1, %v2881_v42 }
0x1163   : > { %2984 = vmatprep.mubr.f32.mxu1 %v5744_v16 }
0x1166   : > { %3856 = vmatmul.mubr.msk.f32.gmra.mrb[72].mxu1 %vm1064_vm1, %v4159_v29 }
0x1167   : > { %3184 = vmatprep.mubr.f32.mxu1 %v5744_v16 }
0x1178   : > { %v4068_v45 = vpop.f32.mrb[42].mxu0 }
0x1179   : > { %v4069_v49 = vpop.f32.mrb[43].mxu0 }
0x117a   : > { %v4070_v53 = vadd.f32 %v4069_v49, %v4068_v45 }
0x117c   : > { %v4071_v59 = vpop.f32.mrb[44].mxu0  ;;  %3082 = vxpose.xlu0.b32.start [1/2] (short) (narrow) %v4070_v53, 16 }
0x117d   : > { %v4072_v11 = vpop.f32.mrb[45].mxu0 }
0x117e   : > { %v4073_v24 = vadd.f32 %v4072_v11, %v4071_v59 }
0x1180   : > { %3083 = vxpose.xlu0.b32.end [2/2] (short) (narrow) %v4073_v24, 16 }
0x11fc   : > { %v3098_v51 = vpop.trf.xlu0 }
0x11fd   : > { %3857 = vmatmul.mubr.msk.f32.vlgmr.msra.gmra.mrb[74].mxu1 %vm1064_vm1, %v3098_v51 }
0x11fe   : > { %3190 = vmatprep.mubr.f32.mxu1 %v5744_v16 }
0x1200   : > { %v3099_v36 = vpop.trf.xlu0 }
0x1201   : > { %3858 = vmatmul.mubr.msk.f32.gmra.mrb[76].mxu1 %vm1064_vm1, %v3099_v36 }
0x1202   : > { %3307 = vmatprep.mubr.f32.mxu1 %v806_v52 }
0x122d   : > { %v2968_v15 = vpop.f32.mrb[66].mxu1 }
0x122e   : > { %v2991_v48 = vadd.f32 %v4568_v26, %v2968_v15  ;;  %v2970_v33 = vpop.f32.mrb[67].mxu1 }
0x122f   : > { %v2992_v37 = vadd.f32 %v4569_v58, %v2970_v33 }
0x1230   : > { %2999 = vst [vmem:[%s5387_s24 + $0x20] sm:$0xff] %v2991_v48 }
0x1231   : > { %3000 = vst [vmem:[%s5387_s24 + $0x28] sm:$0xff] %v2992_v37  ;;  %v2974_v31 = vpop.f32.mrb[68].mxu1 }
0x1232   : > { %v2993_v9 = vadd.f32 %v4570_v46, %v2974_v31  ;;  %v2976_v41 = vpop.f32.mrb[69].mxu1 }
0x1233   : > { %v2994_v7 = vadd.f32 %v4571_v44, %v2976_v41 }
0x1234   : > { %3001 = vst [vmem:[%s5387_s24 + $0x60] sm:$0xff] %v2993_v9 }
0x1235   : > { %3002 = vst [vmem:[%s5387_s24 + $0x68] sm:$0xff] %v2994_v7  ;;  %v2980_v57 = vpop.f32.mrb[70].mxu1 }
0x1236   : > { %v2995_v1 = vadd.f32 %v4572_v2, %v2980_v57  ;;  %v2982_v30 = vpop.f32.mrb[71].mxu1 }
0x1237   : > { %v2996_v47 = vadd.f32 %v4573_v56, %v2982_v30 }
0x1238   : > { %3003 = vst [vmem:[%s5387_s24 + $0xa0] sm:$0xff] %v2995_v1 }
0x1239   : > { %3004 = vst [vmem:[%s5387_s24 + $0xa8] sm:$0xff] %v2996_v47  ;;  %v2986_v40 = vpop.f32.mrb[72].mxu1  ;;  %v5782_v47 = vld [vmem:[#allocation12_spill] sm:$0xff] }
0x123a   : > { %v2997_v8 = vadd.f32 %v4574_v34, %v2986_v40  ;;  %v2988_v0 = vpop.f32.mrb[73].mxu1  ;;  %v804_v40 = vadd.f32 %v5782_v47, %v5255_v18  ;;  %v5783_v34 = vld [vmem:[#allocation18_spill] sm:$0xff]  ;;  %v4576_v18 = vld [vmem:[%s5690_s7] sm:$0xff] }
0x123b   : > { %v2998_v39 = vadd.f32 %v4575_v3, %v2988_v0  ;;  %v5784_v0 = vld [vmem:[#allocation16_spill] sm:$0xff] }
0x123c   : > { %3005 = vst [vmem:[%s5387_s24 + $0xe0] sm:$0xff] %v2997_v8  ;;  %v812_v8 = vadd.f32 %v5783_v34, %v5282_v25  ;;  %v810_v3 = vadd.f32 %v5784_v0, %v5282_v25  ;;  %v4577_v25 = vld [vmem:[%s5689_s6] ss:$0 sm:$0xff] }
0x123d   : > { %3006 = vst [vmem:[%s5387_s24 + $0xe8] sm:$0xff] %v2998_v39 }
0x12d0   : > { %v3186_v35 = vpop.f32.mrb[74].mxu1 }
0x12d1   : > { %v3188_v27 = vpop.f32.mrb[75].mxu1 }
0x12d4   : > { %v3192_v54 = vpop.f32.mrb[76].mxu1 }
0x12d5   : > { %v3197_v20 = vmax.f32 %v3186_v35, %v3192_v54  ;;  %v3194_v62 = vpop.f32.mrb[77].mxu1 }
0x12d6   : > { %v3204_v19 = vmax.f32 %v3188_v27, %v3194_v62 }
0x12d7   : > { %v3198_v13 = vrot.slane %v3197_v20, 4 }
0x12d8   : > { %v3205_v38 = vrot.slane %v3204_v19, 4 }
0x12d9   : > { %v3199_v6 = vmax.f32 %v3197_v20, %v3198_v13 }
0x12da   : > { %v3206_v17 = vmax.f32 %v3204_v19, %v3205_v38 }
0x12db   : > { %v3200_v60 = vrot.slane %v3199_v6, 2 }
0x12dc   : > { %v3207_v63 = vrot.slane %v3206_v17, 2 }
0x12dd   : > { %v3201_v43 = vmax.f32 %v3199_v6, %v3200_v60  ;;  %v4578_v6 = vld [vmem:[%s5690_s7 + $0x8] sm:$0xff] }
0x12de   : > { %v3208_v61 = vmax.f32 %v3206_v17, %v3207_v63 }
0x12df   : > { %v3202_v50 = vrot.slane %v3201_v43, 1 }
0x12e0   : > { %v3209_v55 = vrot.slane %v3208_v61, 1 }
0x12e1   : > { %v3203_v4 = vmax.f32 %v3201_v43, %v3202_v50  ;;  %v4579_v50 = vld [vmem:[%s5691_s8 + $0x8] sm:$0xff] }
0x12e2   : > { %v3210_v5 = vmax.f32 %v3208_v61, %v3209_v55  ;;  %v4580_v55 = vld [vmem:[%s5691_s8 + $0x10] sm:$0xff] }
0x12e3   : > { %v3211_v12 = vsub.f32 %v3186_v35, %v3203_v4  ;;  %v3213_v14 = vsub.f32 %v3192_v54, %v3203_v4  ;;  %v4581_v4 = vld [vmem:[%s5691_s8 + $0x18] sm:$0xff] }
0x12e4   : > { %v3212_v22 = vsub.f32 %v3188_v27, %v3210_v5  ;;  %v3214_v23 = vsub.f32 %v3194_v62, %v3210_v5 }
0x12e5   : > { %v3215_v28 = vmul.f32 1.442695, %v3211_v12  ;;  %v3219_v29 = vmul.f32 1.442695, %v3213_v14 }
0x12e6   : > { %v3217_v42 = vmul.f32 1.442695, %v3212_v22  ;;  %v3221_v45 = vmul.f32 1.442695, %v3214_v23 }
0x12e7   : > { %4548 = vpow2.f32 %v3215_v28  ;;  %v4582_v28 = vld [vmem:[%s4860_s27 + $0x30] sm:$0xff] }
0x12e8   : > { %4550 = vpow2.f32 %v3219_v29 }
0x12e9   : > { %4552 = vpow2.f32 %v3217_v42 }
0x12ea   : > { %4554 = vpow2.f32 %v3221_v45  ;;  %v4583_v45 = vld [vmem:[%s4860_s27 + $0x38] sm:$0xff] }
0x12f1   : > { %v4549_v49 = vpop.eup %4548 }
0x12f2   : > { %v4551_v53 = vpop.eup %4550 }
0x12f3   : > { %v4553_v59 = vpop.eup %4552  ;;  %v3223_v11 = vadd.f32 %v4551_v53, %v4549_v49 }
0x12f4   : > { %v4555_v24 = vpop.eup %4554 }
0x12f5   : > { %v3224_v51 = vrot.slane %v3223_v11, 4  ;;  %v3230_v10 = vadd.f32 %v4555_v24, %v4553_v59 }
0x12f7   : > { %v3225_v52 = vadd.f32 %v3224_v51, %v3223_v11  ;;  %v3231_v36 = vrot.slane %v3230_v10, 4 }
0x12f9   : > { %v3226_v15 = vrot.slane %v3225_v52, 2  ;;  %v3232_v26 = vadd.f32 %v3231_v36, %v3230_v10 }
0x12fb   : > { %v3227_v48 = vadd.f32 %v3226_v15, %v3225_v52  ;;  %v3233_v33 = vrot.slane %v3232_v26, 2  ;;  %v4586_v52 = vld [vmem:[%s4860_s27 + $0xb0] sm:$0xff] }
0x12fd   : > { %v3228_v58 = vrot.slane %v3227_v48, 1  ;;  %v3234_v37 = vadd.f32 %v3233_v33, %v3232_v26  ;;  %v4587_v26 = vld [vmem:[%s4860_s27 + $0xb8] sm:$0xff] }
0x12ff   : > { %v3229_v31 = vadd.f32 %v3228_v58, %v3227_v48  ;;  %v3235_v46 = vrot.slane %v3234_v37, 1  ;;  %v4588_v58 = vld [vmem:[%s4860_s27 + $0xf0] sm:$0xff] }
0x1301   : > { %4556 = vrcp.f32 %v3229_v31  ;;  %v3236_v9 = vadd.f32 %v3235_v46, %v3234_v37  ;;  %v4589_v46 = vld [vmem:[%s4860_s27 + $0xf8] sm:$0xff] }
0x1303   : > { %4558 = vrcp.f32 %v3236_v9 }
0x130b   : > { %v4557_v41 = vpop.eup %4556 }
0x130c   : > { %v3238_v44 = vmul.f32 %v4557_v41, %v4549_v49  ;;  %v3241_v7 = vmul.f32 %v4557_v41, %v4551_v53 }
0x130d   : > { %v4559_v57 = vpop.eup %4558 }
0x130e   : > { %v3240_v2 = vmul.f32 %v4559_v57, %v4553_v59  ;;  %v3242_v1 = vmul.f32 %v4559_v57, %v4555_v24  ;;  %v4428_v30 = vpack.c.bf16 %v3241_v7, %v3238_v44  ;;  %v4584_v59 = vld [vmem:[%s4860_s27 + $0x70] sm:$0xff]  ;;  %v4585_v24 = vld [vmem:[%s4860_s27 + $0x78] sm:$0xff] }
0x1310   : > { %v4426_v56 = vpack.c.bf16 %v3242_v1, %v3240_v2 }
0x1312   : > { %4427 = vmatprep.subr.bf16.mxu1 %v4426_v56 }
0x1313   : > { %4429 = vmatpush1.bf16.xpose.msra.mxu1 %v4428_v30 }
0x1314   : > { %4432 = vmatprep.subr.msk.bf16.mxu1 %vm5270_vm2, %v5752_v21 }
0x131a   : > { %3308 = vmatmul.mubr.f32.vlgmr.msra.gmra.mrb[78].mxu1 %v804_v40 }
0x131b   : > { %3312 = vmatprep.mubr.f32.mxu1 %v812_v8  ;;  %4435 = vmatpush3.bf16.xpose.msk.msra.mxu1 %vm5270_vm2, %v5752_v21 }
0x131e   : > { %3313 = vmatmul.mubr.f32.gmra.mrb[80].mxu1 %v810_v3 }
0x13ed   : > { %v3309_v39 = vpop.f32.mrb[78].mxu1 }
0x13ee   : > { %v3311_v35 = vpop.f32.mrb[79].mxu1  ;;  %4164 = vmatprep.mubr.msk.f32.mxu1 %vm1064_vm1, %v3309_v39 }
0x13f1   : > { %v3314_v27 = vpop.f32.mrb[80].mxu1 }
0x13f2   : > { %v3316_v54 = vpop.f32.mrb[81].mxu1  ;;  %4165 = vmatmul.mubr.msk.f32.vlgmr.msra.gmra.mrb[82].mxu1 %vm1064_vm1, %v3314_v27 }
0x13f3   : > { %4171 = vmatprep.mubr.msk.f32.mxu1 %vm1064_vm1, %v4576_v18 }
0x14c5   : > { %v4166_v32 = vpop.f32.mrb[82].mxu1 }
0x14c6   : > { %v3396_v21 = vadd.f32 %v4577_v25, %v4166_v32  ;;  %v3390_v20 = vpop.f32.mrb[83].mxu1 }
0x14c7   : > { %v3391_v62 = vadd.f32 %v4577_v25, %v3390_v20 }
0x14c8   : > { %v3400_v19 = vsub.f32 %v3396_v21, %v3314_v27 }
0x14c9   : > { %v3399_v13 = vsub.f32 %v3391_v62, %v3309_v39 }
0x14cb   : > { %v4436_v38 = vpack.c.bf16 %v3400_v19, %v3399_v13 }
0x14cd   : > { %4437 = vmatprep.subr.bf16.mxu1 %v4436_v38 }
0x14ce   : > { %4439 = vmatpush3.bf16.msra.mxu1 %v4436_v38 }
0x14cf   : > { %4445 = vmatprep.subr.bf16.mxu1 %v4426_v56 }
0x14d1   : > { %4172 = vmatmul.mubr.msk.f32.vlgmr.msra.gmra.mrb[84].mxu1 %vm1064_vm1, %v4578_v6 }
0x14d2   : > { %4447 = vmatpush1.bf16.msra.mxu1 %v4428_v30  ;;  %3639 = vmatprep.mubr.f32.mxu1 %v5744_v16 }
0x15a4   : > { %v4173_v17 = vpop.f32.mrb[84].mxu1 }
0x15a5   : > { %v3477_v60 = vmax.f32 %v4173_v17, 0.0  ;;  %v3467_v63 = vpop.f32.mrb[85].mxu1 }
0x15a6   : > { %v3476_v43 = vmax.f32 %v3467_v63, 0.0 }
0x15a8   : > { %v4440_v61 = vpack.c.bf16 %v3477_v60, %v3476_v43 }
0x15aa   : > { %4441 = vmatprep.subr.bf16.mxu0 %v4440_v61 }
0x15ab   : > { %4443 = vmatpush3.bf16.msra.mxu0 %v4440_v61 }
0x15ae   : > { %4179 = vmatmul.mubr.msk.f32.vlgmr.msra.gmra.mrb[46].mxu0 %vm1064_vm1, %v4579_v50 }
0x15af   : > { %4181 = vmatprep.mubr.msk.f32.mxu0 %vm1064_vm1, %v4580_v55 }
0x15b2   : > { %4182 = vmatmul.mubr.msk.f32.gmra.mrb[48].mxu0 %vm1064_vm1, %v4581_v4 }
0x1681   : > { %v4180_v5 = vpop.f32.mrb[46].mxu0 }
0x1682   : > { %v3544_v12 = vpop.f32.mrb[47].mxu0 }
0x1683   : > { %3869 = vmatmul.mubr.msk.f32.vlgmr.msra.gmra.mrb[86].mxu1 %vm1064_vm1, %v3544_v12 }
0x1684   : > { %3645 = vmatprep.mubr.f32.mxu1 %v5744_v16 }
0x1685   : > { %v4183_v14 = vpop.f32.mrb[48].mxu0 }
0x1686   : > { %v3554_v22 = vpop.f32.mrb[49].mxu0 }
0x1687   : > { %3870 = vmatmul.mubr.msk.f32.gmra.mrb[88].mxu1 %vm1064_vm1, %v4180_v5 }
0x1688   : > { %3651 = vmatprep.mubr.f32.mxu1 %v5744_v16 }
0x168b   : > { %3871 = vmatmul.mubr.msk.f32.gmra.mrb[90].mxu1 %vm1064_vm1, %v3554_v22 }
0x168c   : > { %3657 = vmatprep.mubr.f32.mxu1 %v5744_v16 }
0x168f   : > { %3872 = vmatmul.mubr.msk.f32.gmra.mrb[92].mxu1 %vm1064_vm1, %v4183_v14 }
0x1756   : > { %v3641_v23 = vpop.f32.mrb[86].mxu1 }
0x1757   : > { %v3664_v29 = vadd.f32 %v4582_v28, %v3641_v23  ;;  %v3643_v42 = vpop.f32.mrb[87].mxu1 }
0x1758   : > { %v3665_v49 = vadd.f32 %v4583_v45, %v3643_v42 }
0x1759   : > { %3672 = vst [vmem:[%s5387_s24 + $0x30] sm:$0xff] %v3664_v29 }
0x175a   : > { %3673 = vst [vmem:[%s5387_s24 + $0x38] sm:$0xff] %v3665_v49  ;;  %v3647_v53 = vpop.f32.mrb[88].mxu1 }
0x175b   : > { %v3666_v16 = vadd.f32 %v4584_v59, %v3647_v53  ;;  %v3649_v11 = vpop.f32.mrb[89].mxu1 }
0x175c   : > { %v3667_v51 = vadd.f32 %v4585_v24, %v3649_v11 }
0x175d   : > { %3674 = vst [vmem:[%s5387_s24 + $0x70] sm:$0xff] %v3666_v16 }
0x175e   : > { %3675 = vst [vmem:[%s5387_s24 + $0x78] sm:$0xff] %v3667_v51  ;;  %v3653_v10 = vpop.f32.mrb[90].mxu1 }
0x175f   : > { %v3668_v36 = vadd.f32 %v4586_v52, %v3653_v10  ;;  %v3655_v15 = vpop.f32.mrb[91].mxu1 }
0x1760   : > { %v3669_v48 = vadd.f32 %v4587_v26, %v3655_v15 }
0x1761   : > { %3676 = vst [vmem:[%s5387_s24 + $0xb0] sm:$0xff] %v3668_v36 }
0x1762   : > { %3677 = vst [vmem:[%s5387_s24 + $0xb8] sm:$0xff] %v3669_v48  ;;  %v3659_v33 = vpop.f32.mrb[92].mxu1 }
0x1763   : > { %v3670_v37 = vadd.f32 %v4588_v58, %v3659_v33  ;;  %v3661_v31 = vpop.f32.mrb[93].mxu1 }
0x1764   : > { %v3671_v9 = vadd.f32 %v4589_v46, %v3661_v31 }
0x1765   : > { %3678 = vst [vmem:[%s5387_s24 + $0xf0] sm:$0xff] %v3670_v37 }
0x1766   : > { %3679 = vst [vmem:[%s5387_s24 + $0xf8] sm:$0xff] %v3671_v9 }
0x1767   : > { %4633 = shalt.err (!%p4630_p5)
}
0x1768   : > { %s4634_s27 = scalar_lea.hbm %s5633_s16, 4096  ;;  %s4638_s19 = scalar_lea.hbm %s5692_s9, 8192 }
0x1769   : > { %p4635_p7 = scmp.ne.s32.totalorder %s5633_s16, %s4634_s27  ;;  %p4639_p0 = scmp.lt.u32.totalorder %s5633_s16, %s5692_s9 }
0x176a   : > { %p4640_p2 = scmp.lt.u32.totalorder %s4638_s19, %s4634_s27  ;;  %p4642_p11 = scmp.lt.u32.totalorder %s4634_s27, %s5633_s16 }
0x176b   : > { %p4636_p8 = pnand %p4635_p7, %p5785_p12 }
0x176c   : > { %p4641_p6 = por %p4640_p2, %p4639_p0 }
0x176d   : > { %p4637_p9 = pneg %p4636_p8 }
0x176e   : > { %p4643_p13 = por %p4642_p11, %p4641_p6 }
0x1770   : > { %p4644_p4 = pnand %p4643_p13, %p4637_p9 }
0x1772   : > { %4647 = shalt.err (!%p4644_p4)
}
0x1773   : > { %s4695_s17 = smov 1024   ;;  %s4696_s29 = smov 2048  }
0x1774   : > { %s4697_s25 = smov 64  }
0x1775   : > { %4450 = dma.vmem_to_hbm [thread:$0]  (%p5785_p12), %s5636_s28, 4096, %s5633_s16, %s3681_s13, %s4695_s17, %s4696_s29, %s4697_s25  }
0x1776 PF: > { %s3709_s24 = sand.u32 1, %s4674_s30   ;;  %p5786_p10 = scmp.ne.s32.totalorder %s5713_s22, 0 }
0x1777   : > { %p5787_p1 = scmp.ge.s32.totalorder %s4686_s12, 2  ;;  %s3710_s27 = scalar_lea.sflag [#allocation4], %s3709_s24 }
0x1779   : > { %p4457_p3 = pnand %p5787_p1, %p5786_p10 }
0x177b   : > { %4669 = dma.done.wait (!%p4457_p3), %s3710_s27, 4096  }
0x177c   : > { %4671 = vsyncadd (!%p4457_p3), %s3710_s27, 4294963200  ;;  %p22_p5 = scmp.ge.s32.totalorder %s4773_s15, 4   ;;  %s5788_s30 = smov %s4678_s10 }
0x177d   : > { %s5789_s10 = smov %s4682_s11  ;;  %s5790_s11 = smov %s4785_s18 }
0x177e   : > { %s5791_s12 = smov %s4773_s15  ;;  %24 = sbr.rel (!%p22_p5) target bundleno = 5 (0x5), region = 104 }
0x1785   :  { %3715 = vsyncpa [#allocation3], 1 }
0x1786   :  { %3717 = vsyncpa [#allocation3 + $0x1], 1 }
0x1787   :  { %3718 = vsyncpa [#allocation4], 1 }
0x1788   :  { %3720 = vsyncpa [#allocation4 + $0x1], 1 }

</bundles_post_ra>
